<compile_context>
chip_gen: v6e
topology: v6e:2x2x1
jax: 0.10.0
libtpu: 0.0.40
codegen_flags: <defaults>
</compile_context>

<pallas_src>
import numpy as np
import jax
import jax.numpy as jnp
from jax.experimental import pallas as pl
from jax.experimental.pallas import tpu as pltpu

_EPS = 1e-5
_K = 3   # Conv1d kernel_size used by every block (padding = (K-1)//2 = 1)


# ----------------------------------------------------------------------------
# Fused whole-network kernel
# ----------------------------------------------------------------------------

def _make_unet_kernel(n_batch, t_in, num_down, num_level, num_up):
    """Builds kernel(x_ref, *param_refs, o_ref, buf_ref) running the full
    UNet1D forward with every activation resident in VMEM.

    Parameter ref order (must match the wrapper's flattening):
      down blocks : w (3,Cin,Co), b (1,Co), gamma (1,Co), beta (1,Co)
      level blocks: w, b, gamma, beta
      up blocks   : w1 (3,C1,C1/2), b1 (1,C1/2), uw (N*t,6),
                    w2a (3,C1/2,Co), w2b (3,C1/2,Co), b2 (1,Co), gamma, beta
    """

    def kernel(*refs):
        x_ref = refs[0]
        o_ref = refs[-2]
        buf = refs[-1]                      # shared VMEM scratch (rows, cols)
        prm = iter(refs[1:-2])
        mask_cache = {}

        def seg_masks(m, t_len):
            # (M, 1) float keep-masks: 0 at the first / last time step of every
            # batch segment of the flattened (M, C) layout.  Built once per
            # resolution and reused by every conv at that resolution.
            key = (m, t_len)
            if key not in mask_cache:
                ri = jax.lax.broadcasted_iota(jnp.int32, (m, 1), 0)
                isf = ri == 0
                isl = ri == (t_len - 1)
                for n in range(1, n_batch):
                    isf = jnp.logical_or(isf, ri == n * t_len)
                    isl = jnp.logical_or(isl, ri == n * t_len + t_len - 1)
                keep_first = jnp.where(isf, 0.0, 1.0).astype(jnp.float32)
                keep_last = jnp.where(isl, 0.0, 1.0).astype(jnp.float32)
                mask_cache[key] = (keep_first, keep_last)
            return mask_cache[key]

        def stage_shifts(h):
            # Stage h once at row offset 1 (halo rows 0 and m+1 zeroed so stale
            # VMEM can never leak in), then read the two +-1 shifted windows.
            m, c = h.shape
            z = jnp.zeros((1, c), jnp.float32)
            buf[pl.ds(0, 1), 0:c] = z
            buf[pl.ds(m + 1, 1), 0:c] = z
            buf[pl.ds(1, m), 0:c] = h
            h_prev = buf[pl.ds(0, m), 0:c]        # row j -> h[j-1]
            h_next = buf[pl.ds(2, m), 0:c]        # row j -> h[j+1]
            return h_prev, h_next

        def conv3(h, w_ref, t_len):
            # 'same' Conv1d(K=3) of the flattened activation as three K=Cin
            # matmuls; segment isolation via (M,1) keep-masks on the shifted taps.
            m, cin = h.shape
            kf, kl = seg_masks(m, t_len)
            hp, hn = stage_shifts(h)
            return (jnp.dot(hp * kf, w_ref[0], preferred_element_type=jnp.float32)
                    + jnp.dot(h, w_ref[1], preferred_element_type=jnp.float32)
                    + jnp.dot(hn * kl, w_ref[2], preferred_element_type=jnp.float32))

        def conv3_bias_relu(h, w_ref, b_ref, t_len):
            return jnp.maximum(conv3(h, w_ref, t_len) + b_ref[...], 0.0)

        def batchnorm(h, g_ref, beta_ref):
            # nn.BatchNorm1d training-mode forward: biased batch statistics over
            # (N, T); normalization fused into a single FMA pass.
            inv_m = 1.0 / float(h.shape[0])
            mean = jnp.sum(h, axis=0, keepdims=True) * inv_m
            var = jnp.maximum(
                jnp.sum(h * h, axis=0, keepdims=True) * inv_m - mean * mean, 0.0)
            scale = g_ref[...] * jax.lax.rsqrt(var + _EPS)
            shift = beta_ref[...] - mean * scale
            return h * scale + shift

        def maxpool2(h):
            # MaxPool1d(2): stage once, read even / odd rows with stride-2 loads
            # (pairs never straddle a batch segment because t is even).
            m, c = h.shape
            buf[pl.ds(0, m), 0:c] = h
            even = buf[pl.ds(0, m // 2, 2), 0:c]
            odd = buf[pl.ds(1, m // 2, 2), 0:c]
            return jnp.maximum(even, odd)

        def upsample2(h1, uw_ref):
            # O(T) linear upsample (align_corners=True).  Each output row is a
            # 3-tap combination of source rows j//2-1, j//2, j//2+1 with
            # precomputed weights (uw columns 0..2 for even output rows,
            # 3..5 for odd ones).  Boundary taps have zero weight, so the
            # shifted windows need no masking.  The even/odd results are
            # interleaved with two stride-2 stores.
            m, c = h1.shape
            sp, sn = stage_shifts(h1)
            uw = uw_ref[...]                                     # (m, 6)
            ev = uw[:, 0:1] * sp + uw[:, 1:2] * h1 + uw[:, 2:3] * sn
            od = uw[:, 3:4] * sp + uw[:, 4:5] * h1 + uw[:, 5:6] * sn
            buf[pl.ds(0, m, 2), 0:c] = ev                        # rows 0,2,...
            buf[pl.ds(1, m, 2), 0:c] = od                        # rows 1,3,...
            return buf[pl.ds(0, 2 * m), 0:c]                     # (2m, c)

        # -------------------- forward (statically unrolled) --------------------
        t = t_in
        h = x_ref[...]                                           # (N*T, C_in) f32
        skips = []                                               # (activation, t)
        for _ in range(num_down):                                # UDownBlock1D
            w, b, g, bt = next(prm), next(prm), next(prm), next(prm)
            cout = conv3_bias_relu(h, w, b, t)                   # skip = pre-pool
            skips.append((cout, t))
            h = batchnorm(maxpool2(cout), g, bt)
            t //= 2
        for _ in range(num_level):                               # ULevelBlock1D
            w, b, g, bt = next(prm), next(prm), next(prm), next(prm)
            h = batchnorm(conv3_bias_relu(h, w, b, t), g, bt)
        for _ in range(num_up):                                  # UUpBlock1D
            w1, b1, uw = next(prm), next(prm), next(prm)
            w2a, w2b, b2 = next(prm), next(prm), next(prm)
            g, bt = next(prm), next(prm)
            h1 = conv3_bias_relu(h, w1, b1, t)                   # (N*t, C1/2)
            up = upsample2(h1, uw)                               # (N*2t, C1/2)
            skip, t_skip = skips.pop()
            t *= 2
            assert t_skip == t
            # conv2(cat([up, skip], channels)) == conv2a(up) + conv2b(skip)
            acc = conv3(up, w2a, t) + conv3(skip, w2b, t) + b2[...]
            h = batchnorm(jnp.maximum(acc, 0.0), g, bt)
        assert next(prm, None) is None
        o_ref[...] = h                                           # (N*T, C_out)

    return kernel


# ----------------------------------------------------------------------------
# Host-side helpers
# ----------------------------------------------------------------------------

def _upsample_matrix(t_src):
    """(2t, t) matrix of nn.Upsample(scale_factor=2, mode='linear',
    align_corners=True)."""
    t_dst = 2 * t_src
    u = np.zeros((t_dst, t_src), np.float32)
    if t_src == 1:
        u[:, 0] = 1.0
        return u
    for j in range(t_dst):
        pos = j * (t_src - 1) / (t_dst - 1)
        i0 = min(int(np.floor(pos)), t_src - 1)
        i1 = min(i0 + 1, t_src - 1)
        frac = pos - i0
        u[j, i0] += 1.0 - frac
        u[j, i1] += frac
    return u


def _upsample_taps(n_batch, t_src):
    """(N*t, 6) tap table: for source row i, columns 0..2 are the weights of
    (x[i-1], x[i], x[i+1]) for output row 2i, columns 3..5 for output row 2i+1."""
    u = _upsample_matrix(t_src)
    taps = np.zeros((t_src, 6), np.float32)
    for i in range(t_src):
        for half, j in enumerate((2 * i, 2 * i + 1)):
            prev_w = u[j, i - 1] if i - 1 >= 0 else 0.0
            cur_w = u[j, i]
            next_w = u[j, i + 1] if i + 1 < t_src else 0.0
            # all interpolation mass must be inside the 3-tap window
            assert abs(prev_w + cur_w + next_w - float(u[j].sum())) < 1e-6
            taps[i, 3 * half:3 * half + 3] = (prev_w, cur_w, next_w)
    # boundary taps are zero -> shifted reads across segment boundaries are safe
    assert taps[0, 0] == 0.0 and taps[0, 3] == 0.0
    assert taps[-1, 2] == 0.0 and taps[-1, 5] == 0.0
    return jnp.asarray(np.tile(taps, (n_batch, 1)))


def _pad2d_bytes(r, c, itemsize=4):
    """(8,128)-padded f32 footprint of a 2-D VMEM-resident array."""
    return ((r + 7) // 8) * 8 * ((c + 127) // 128) * 128 * itemsize


def unet1d_forward(x_nct, params):
    """UNet1D forward.  x_nct: (N, C_in, T) as in PyTorch.  Returns (N, C_out, T)."""
    N, c_in, T = x_nct.shape
    down_ch = [p['w'].shape[2] for p in params['down']]
    level_ch = [p['w'].shape[2] for p in params['level']]
    up_ch = [p['w2'].shape[2] for p in params['up']]
    assert T % (2 ** len(down_ch)) == 0

    # NCT -> flattened (N*T, C) batch-major / time-minor layout used in-kernel.
    x2d = jnp.transpose(x_nct, (0, 2, 1)).reshape(N * T, c_in).astype(jnp.float32)

    flat = []            # kernel parameter inputs, in kernel consumption order
    widths = [c_in] + down_ch + level_ch + up_ch   # staged channel widths
    for p in params['down'] + params['level']:
        flat += [p['w'], p['b'], p['gamma'], p['beta']]
    t = T // (2 ** len(down_ch))
    for p in params['up']:
        k, cin, chalf = p['w1'].shape                       # chalf == cin // 2
        widths += [cin, chalf]
        w2a = p['w2'][:, :chalf, :]                         # half acting on up
        w2b = p['w2'][:, chalf:, :]                         # half acting on skip
        flat += [p['w1'], p['b1'], _upsample_taps(N, t), w2a, w2b,
                 p['b2'], p['gamma'], p['beta']]
        t *= 2
    assert t == T

    scratch_rows = N * T + 8
    scratch_cols = max(widths)

    # ---- VMEM budget from the real (8,128)-padded footprint -----------------
    vmem_need = _pad2d_bytes(N * T, c_in) + _pad2d_bytes(N * T, up_ch[-1])
    vmem_need += _pad2d_bytes(scratch_rows, scratch_cols)
    for a in flat:
        if a.ndim == 3:
            vmem_need += a.shape[0] * _pad2d_bytes(a.shape[1], a.shape[2])
        else:
            vmem_need += _pad2d_bytes(a.shape[0], a.shape[1])
    tt, prev_c = T, c_in
    for c in down_ch:                      # conv in/out + relu + live skip
        vmem_need += 4 * _pad2d_bytes(N * tt, max(prev_c, c))
        prev_c, tt = c, tt // 2
    for c in level_ch:
        vmem_need += 3 * _pad2d_bytes(N * tt, max(prev_c, c))
        prev_c = c
    for p, c in zip(params['up'], up_ch):
        tt *= 2
        vmem_need += 5 * _pad2d_bytes(N * tt, max(c, p['w1'].shape[1]))
        prev_c = c
    vmem_limit = int(min(max(2 * vmem_need + (8 << 20), 32 << 20), 64 << 20))

    kernel = _make_unet_kernel(N, T, len(down_ch), len(level_ch), len(up_ch))
    y2d = pl.pallas_call(
        kernel,
        out_shape=jax.ShapeDtypeStruct((N * T, up_ch[-1]), jnp.float32),
        scratch_shapes=[pltpu.VMEM((scratch_rows, scratch_cols), jnp.float32)],
        compiler_params=pltpu.CompilerParams(vmem_limit_bytes=vmem_limit),
    )(x2d, *flat)
    return jnp.transpose(y2d.reshape(N, T, up_ch[-1]), (0, 2, 1))


# ----------------------------------------------------------------------------
# Parameter construction (deterministic, mimics PyTorch default init ranges)
# ----------------------------------------------------------------------------

def _init_conv(key, cin, cout, K=_K):
    k1, k2 = jax.random.split(key)
    bound = 1.0 / np.sqrt(cin * K)
    w = jax.random.uniform(k1, (K, cin, cout), jnp.float32, -bound, bound)
    b = jax.random.uniform(k2, (1, cout), jnp.float32, -bound, bound)
    return w, b


def _init_bn(c):
    return jnp.ones((1, c), jnp.float32), jnp.zeros((1, c), jnp.float32)


def build_unet1d_params(key, in_channels, down_channels, level_channels,
                        up_channels, K=_K):
    params = {'down': [], 'level': [], 'up': []}
    down_in = [in_channels] + down_channels[:-1]
    for cin, cout in zip(down_in, down_channels):
        key, k = jax.random.split(key)
        w, b = _init_conv(k, cin, cout, K)
        g, bt = _init_bn(cout)
        params['down'].append({'w': w, 'b': b, 'gamma': g, 'beta': bt})
    level_in = [down_channels[-1]] + level_channels[:-1]
    for cin, cout in zip(level_in, level_channels):
        key, k = jax.random.split(key)
        w, b = _init_conv(k, cin, cout, K)
        g, bt = _init_bn(cout)
        params['level'].append({'w': w, 'b': b, 'gamma': g, 'beta': bt})
    up_in = [level_channels[-1]] + up_channels[:-1]
    for cin, cout in zip(up_in, up_channels):
        key, k1, k2 = jax.random.split(key, 3)
        w1, b1 = _init_conv(k1, cin, cin // 2, K)
        w2, b2 = _init_conv(k2, cin, cout, K)
        g, bt = _init_bn(cout)
        params['up'].append({'w1': w1, 'b1': b1, 'w2': w2, 'b2': b2,
                             'gamma': g, 'beta': bt})
    return params


# ----------------------------------------------------------------------------
# Pure-JAX reference (mirrors the PyTorch forward) for validation
# ----------------------------------------------------------------------------

def _reference_forward(x_nct, params):
    HI = jax.lax.Precision.HIGHEST

    def conv1d_same(h, w, b):                                 # h (N,T,C) NTC
        N, T, _ = h.shape
        hp = jnp.pad(h, ((0, 0), (1, 1), (0, 0)))
        acc = sum(jnp.einsum('ntc,co->nto', hp[:, k:k + T, :], w[k], precision=HI)
                  for k in range(w.shape[0]))
        return acc + b

    def bn(h, g, beta):
        mean = jnp.mean(h, axis=(0, 1), keepdims=True)
        var = jnp.mean((h - mean) ** 2, axis=(0, 1), keepdims=True)
        return (h - mean) * jax.lax.rsqrt(var + _EPS) * g + beta

    def upsample_linear(h):                                   # (N,T,C) -> (N,2T,C)
        u = jnp.asarray(_upsample_matrix(h.shape[1]))
        return jnp.einsum('ot,ntc->noc', u, h, precision=HI)

    h = jnp.transpose(x_nct, (0, 2, 1)).astype(jnp.float32)
    skips = []
    for p in params['down']:
        cout = jax.nn.relu(conv1d_same(h, p['w'], p['b']))
        skips.append(cout)
        pooled = jnp.maximum(cout[:, 0::2, :], cout[:, 1::2, :])
        h = bn(pooled, p['gamma'], p['beta'])
    for p in params['level']:
        h = bn(jax.nn.relu(conv1d_same(h, p['w'], p['b'])), p['gamma'], p['beta'])
    for p, skip in zip(params['up'], reversed(skips)):
        h1 = upsample_linear(jax.nn.relu(conv1d_same(h, p['w1'], p['b1'])))
        cat = jnp.concatenate([h1, skip], axis=2)
        h = bn(jax.nn.relu(conv1d_same(cat, p['w2'], p['b2'])),
               p['gamma'], p['beta'])
    return jnp.transpose(h, (0, 2, 1))


# ----------------------------------------------------------------------------
# Main
# ----------------------------------------------------------------------------

if __name__ == "__main__":
    # Config consistent with UNet1D constraints (level[-1] == 2*down[-1],
    # up channel chain matches the reversed skips).
    IN_CH = 4
    DOWN = [8, 16]
    LEVEL = [32]
    UP = [16, 4]
    N, T = 2, 16

    key = jax.random.PRNGKey(0)
    key, kx, kp = jax.random.split(key, 3)
    x = jax.random.normal(kx, (N, IN_CH, T), jnp.float32)     # PyTorch NCT layout
    params = build_unet1d_params(kp, IN_CH, DOWN, LEVEL, UP)

    y = jax.block_until_ready(unet1d_forward(x, params))
    assert y.shape == (N, UP[-1], T), y.shape

    y_ref = jax.block_until_ready(_reference_forward(x, params))
    np.testing.assert_allclose(np.asarray(y), np.asarray(y_ref),
                               rtol=3e-2, atol=3e-2)
    print("KERNEL_OK")
</pallas_src>

<mosaic_0001>
module attributes {stable_mosaic.version = 11 : i64} {
  func.func @kernel(%arg0: memref<32x4xf32, #tpu.memory_space<vmem>>, %arg1: memref<3x4x8xf32, #tpu.memory_space<vmem>>, %arg2: memref<1x8xf32, #tpu.memory_space<vmem>>, %arg3: memref<1x8xf32, #tpu.memory_space<vmem>>, %arg4: memref<1x8xf32, #tpu.memory_space<vmem>>, %arg5: memref<3x8x16xf32, #tpu.memory_space<vmem>>, %arg6: memref<1x16xf32, #tpu.memory_space<vmem>>, %arg7: memref<1x16xf32, #tpu.memory_space<vmem>>, %arg8: memref<1x16xf32, #tpu.memory_space<vmem>>, %arg9: memref<3x16x32xf32, #tpu.memory_space<vmem>>, %arg10: memref<1x32xf32, #tpu.memory_space<vmem>>, %arg11: memref<1x32xf32, #tpu.memory_space<vmem>>, %arg12: memref<1x32xf32, #tpu.memory_space<vmem>>, %arg13: memref<3x32x16xf32, #tpu.memory_space<vmem>>, %arg14: memref<1x16xf32, #tpu.memory_space<vmem>>, %arg15: memref<8x6xf32, #tpu.memory_space<vmem>>, %arg16: memref<3x16x16xf32, #tpu.memory_space<vmem>>, %arg17: memref<3x16x16xf32, #tpu.memory_space<vmem>>, %arg18: memref<1x16xf32, #tpu.memory_space<vmem>>, %arg19: memref<1x16xf32, #tpu.memory_space<vmem>>, %arg20: memref<1x16xf32, #tpu.memory_space<vmem>>, %arg21: memref<3x16x8xf32, #tpu.memory_space<vmem>>, %arg22: memref<1x8xf32, #tpu.memory_space<vmem>>, %arg23: memref<16x6xf32, #tpu.memory_space<vmem>>, %arg24: memref<3x8x4xf32, #tpu.memory_space<vmem>>, %arg25: memref<3x8x4xf32, #tpu.memory_space<vmem>>, %arg26: memref<1x4xf32, #tpu.memory_space<vmem>>, %arg27: memref<1x4xf32, #tpu.memory_space<vmem>>, %arg28: memref<1x4xf32, #tpu.memory_space<vmem>>, %arg29: memref<32x4xf32, #tpu.memory_space<vmem>>, %arg30: memref<40x32xf32, #tpu.memory_space<vmem>>) attributes {dimension_semantics = [], scalar_prefetch = 0 : i64, scratch_operands = 1 : i64, tpu.core_type = #tpu.core_type<tc>} {
    %c0 = arith.constant 0 : index
    %c0_0 = arith.constant 0 : index
    %0 = vector.load %arg0[%c0, %c0_0] : memref<32x4xf32, #tpu.memory_space<vmem>>, vector<32x4xf32>
    %1 = tpu.iota {dimensions = array<i32: 0>} : vector<32x1xi32>
    %c0_i32 = arith.constant 0 : i32
    %2 = vector.broadcast %c0_i32 : i32 to vector<32x1xi32>
    %3 = arith.cmpi eq, %1, %2 : vector<32x1xi32>
    %c15_i32 = arith.constant 15 : i32
    %4 = vector.broadcast %c15_i32 : i32 to vector<32x1xi32>
    %5 = arith.cmpi eq, %1, %4 : vector<32x1xi32>
    %c16_i32 = arith.constant 16 : i32
    %6 = vector.broadcast %c16_i32 : i32 to vector<32x1xi32>
    %7 = arith.cmpi eq, %1, %6 : vector<32x1xi32>
    %8 = arith.ori %3, %7 : vector<32x1xi1>
    %c31_i32 = arith.constant 31 : i32
    %9 = vector.broadcast %c31_i32 : i32 to vector<32x1xi32>
    %10 = arith.cmpi eq, %1, %9 : vector<32x1xi32>
    %11 = arith.ori %5, %10 : vector<32x1xi1>
    %cst = arith.constant 0.000000e+00 : f32
    %cst_1 = arith.constant 1.000000e+00 : f32
    %12 = vector.broadcast %cst : f32 to vector<32x1xf32>
    %13 = vector.broadcast %cst_1 : f32 to vector<32x1xf32>
    %14 = arith.select %8, %12, %13 : vector<32x1xi1>, vector<32x1xf32>
    %cst_2 = arith.constant 0.000000e+00 : f32
    %cst_3 = arith.constant 1.000000e+00 : f32
    %15 = vector.broadcast %cst_2 : f32 to vector<32x1xf32>
    %16 = vector.broadcast %cst_3 : f32 to vector<32x1xf32>
    %17 = arith.select %11, %15, %16 : vector<32x1xi1>, vector<32x1xf32>
    %cst_4 = arith.constant 0.000000e+00 : f32
    %18 = vector.broadcast %cst_4 : f32 to vector<1x4xf32>
    %c0_5 = arith.constant 0 : index
    %c0_6 = arith.constant 0 : index
    %19 = vector.load %arg30[%c0_5, %c0_6] : memref<40x32xf32, #tpu.memory_space<vmem>>, vector<1x4xf32>
    tpu.vector_store %arg30[%c0_5, %c0_6], %18 {strides = array<i32>} : memref<40x32xf32, #tpu.memory_space<vmem>>, vector<1x4xf32>,
    %c33 = arith.constant 33 : index
    %c0_7 = arith.constant 0 : index
    %20 = vector.load %arg30[%c33, %c0_7] : memref<40x32xf32, #tpu.memory_space<vmem>>, vector<1x4xf32>
    tpu.vector_store %arg30[%c33, %c0_7], %18 {strides = array<i32>} : memref<40x32xf32, #tpu.memory_space<vmem>>, vector<1x4xf32>,
    %c1 = arith.constant 1 : index
    %c0_8 = arith.constant 0 : index
    %21 = vector.load %arg30[%c1, %c0_8] : memref<40x32xf32, #tpu.memory_space<vmem>>, vector<32x4xf32>
    tpu.vector_store %arg30[%c1, %c0_8], %0 {strides = array<i32>} : memref<40x32xf32, #tpu.memory_space<vmem>>, vector<32x4xf32>,
    %c0_9 = arith.constant 0 : index
    %c0_10 = arith.constant 0 : index
    %22 = vector.load %arg30[%c0_9, %c0_10] : memref<40x32xf32, #tpu.memory_space<vmem>>, vector<32x4xf32>
    %c2 = arith.constant 2 : index
    %c0_11 = arith.constant 0 : index
    %23 = vector.load %arg30[%c2, %c0_11] : memref<40x32xf32, #tpu.memory_space<vmem>>, vector<32x4xf32>
    %24 = vector.broadcast %14 : vector<32x1xf32> to vector<32x4xf32>
    %25 = arith.mulf %22, %24 : vector<32x4xf32>
    %c0_12 = arith.constant 0 : index
    %c0_13 = arith.constant 0 : index
    %c0_14 = arith.constant 0 : index
    %26 = vector.load %arg1[%c0_12, %c0_13, %c0_14] : memref<3x4x8xf32, #tpu.memory_space<vmem>>, vector<1x4x8xf32>
    %27 = vector.shape_cast %26 : vector<1x4x8xf32> to vector<4x8xf32>
    %cst_15 = arith.constant dense<0.000000e+00> : vector<32x8xf32>
    %28 = tpu.matmul %25, %27, %cst_15 {dimension_numbers = #tpu.dot_dimension_numbers<[1], [0], [0], [1], [0, 0, 1, 1], [], []>} : vector<32x4xf32>, vector<4x8xf32>, vector<32x8xf32> -> vector<32x8xf32>
    %c1_16 = arith.constant 1 : index
    %c0_17 = arith.constant 0 : index
    %c0_18 = arith.constant 0 : index
    %29 = vector.load %arg1[%c1_16, %c0_17, %c0_18] : memref<3x4x8xf32, #tpu.memory_space<vmem>>, vector<1x4x8xf32>
    %30 = vector.shape_cast %29 : vector<1x4x8xf32> to vector<4x8xf32>
    %cst_19 = arith.constant dense<0.000000e+00> : vector<32x8xf32>
    %31 = tpu.matmul %0, %30, %cst_19 {dimension_numbers = #tpu.dot_dimension_numbers<[1], [0], [0], [1], [0, 0, 1, 1], [], []>} : vector<32x4xf32>, vector<4x8xf32>, vector<32x8xf32> -> vector<32x8xf32>
    %32 = arith.addf %28, %31 : vector<32x8xf32>
    %33 = vector.broadcast %17 : vector<32x1xf32> to vector<32x4xf32>
    %34 = arith.mulf %23, %33 : vector<32x4xf32>
    %c2_20 = arith.constant 2 : index
    %c0_21 = arith.constant 0 : index
    %c0_22 = arith.constant 0 : index
    %35 = vector.load %arg1[%c2_20, %c0_21, %c0_22] : memref<3x4x8xf32, #tpu.memory_space<vmem>>, vector<1x4x8xf32>
    %36 = vector.shape_cast %35 : vector<1x4x8xf32> to vector<4x8xf32>
    %cst_23 = arith.constant dense<0.000000e+00> : vector<32x8xf32>
    %37 = tpu.matmul %34, %36, %cst_23 {dimension_numbers = #tpu.dot_dimension_numbers<[1], [0], [0], [1], [0, 0, 1, 1], [], []>} : vector<32x4xf32>, vector<4x8xf32>, vector<32x8xf32> -> vector<32x8xf32>
    %38 = arith.addf %32, %37 : vector<32x8xf32>
    %c0_24 = arith.constant 0 : index
    %c0_25 = arith.constant 0 : index
    %39 = vector.load %arg2[%c0_24, %c0_25] : memref<1x8xf32, #tpu.memory_space<vmem>>, vector<1x8xf32>
    %40 = vector.broadcast %39 : vector<1x8xf32> to vector<32x8xf32>
    %41 = arith.addf %38, %40 : vector<32x8xf32>
    %cst_26 = arith.constant 0.000000e+00 : f32
    %42 = vector.broadcast %cst_26 : f32 to vector<32x8xf32>
    %43 = arith.maximumf %41, %42 : vector<32x8xf32>
    %c0_27 = arith.constant 0 : index
    %c0_28 = arith.constant 0 : index
    %44 = vector.load %arg30[%c0_27, %c0_28] : memref<40x32xf32, #tpu.memory_space<vmem>>, vector<32x8xf32>
    tpu.vector_store %arg30[%c0_27, %c0_28], %43 {strides = array<i32>} : memref<40x32xf32, #tpu.memory_space<vmem>>, vector<32x8xf32>,
    %c0_29 = arith.constant 0 : index
    %c0_30 = arith.constant 0 : index
    %45 = tpu.strided_load %arg30[%c0_29, %c0_30] {strides = array<i32: 2, 1>} : memref<40x32xf32, #tpu.memory_space<vmem>>, vector<16x8xf32>
    %c1_31 = arith.constant 1 : index
    %c0_32 = arith.constant 0 : index
    %46 = tpu.strided_load %arg30[%c1_31, %c0_32] {strides = array<i32: 2, 1>} : memref<40x32xf32, #tpu.memory_space<vmem>>, vector<16x8xf32>
    %47 = arith.maximumf %45, %46 : vector<16x8xf32>
    %cst_33 = arith.constant dense<0.000000e+00> : vector<8xf32>
    %48 = vector.multi_reduction <add>, %47, %cst_33 [0] : vector<16x8xf32> to vector<8xf32>
    %49 = vector.shape_cast %48 : vector<8xf32> to vector<1x8xf32>
    %cst_34 = arith.constant 6.250000e-02 : f32
    %50 = vector.broadcast %cst_34 : f32 to vector<1x8xf32>
    %51 = arith.mulf %49, %50 : vector<1x8xf32>
    %52 = arith.mulf %47, %47 : vector<16x8xf32>
    %cst_35 = arith.constant dense<0.000000e+00> : vector<8xf32>
    %53 = vector.multi_reduction <add>, %52, %cst_35 [0] : vector<16x8xf32> to vector<8xf32>
    %54 = vector.shape_cast %53 : vector<8xf32> to vector<1x8xf32>
    %cst_36 = arith.constant 6.250000e-02 : f32
    %55 = vector.broadcast %cst_36 : f32 to vector<1x8xf32>
    %56 = arith.mulf %54, %55 : vector<1x8xf32>
    %57 = arith.mulf %51, %51 : vector<1x8xf32>
    %58 = arith.subf %56, %57 : vector<1x8xf32>
    %cst_37 = arith.constant 0.000000e+00 : f32
    %59 = vector.broadcast %cst_37 : f32 to vector<1x8xf32>
    %60 = arith.maximumf %58, %59 : vector<1x8xf32>
    %c0_38 = arith.constant 0 : index
    %c0_39 = arith.constant 0 : index
    %61 = vector.load %arg3[%c0_38, %c0_39] : memref<1x8xf32, #tpu.memory_space<vmem>>, vector<1x8xf32>
    %cst_40 = arith.constant 9.99999974E-6 : f32
    %62 = vector.broadcast %cst_40 : f32 to vector<1x8xf32>
    %63 = arith.addf %60, %62 : vector<1x8xf32>
    %64 = math.rsqrt %63 : vector<1x8xf32>
    %65 = arith.mulf %61, %64 : vector<1x8xf32>
    %c0_41 = arith.constant 0 : index
    %c0_42 = arith.constant 0 : index
    %66 = vector.load %arg4[%c0_41, %c0_42] : memref<1x8xf32, #tpu.memory_space<vmem>>, vector<1x8xf32>
    %67 = arith.mulf %51, %65 : vector<1x8xf32>
    %68 = arith.subf %66, %67 : vector<1x8xf32>
    %69 = vector.broadcast %65 : vector<1x8xf32> to vector<16x8xf32>
    %70 = arith.mulf %47, %69 : vector<16x8xf32>
    %71 = vector.broadcast %68 : vector<1x8xf32> to vector<16x8xf32>
    %72 = arith.addf %70, %71 : vector<16x8xf32>
    %73 = tpu.iota {dimensions = array<i32: 0>} : vector<16x1xi32>
    %c0_i32_43 = arith.constant 0 : i32
    %74 = vector.broadcast %c0_i32_43 : i32 to vector<16x1xi32>
    %75 = arith.cmpi eq, %73, %74 : vector<16x1xi32>
    %c7_i32 = arith.constant 7 : i32
    %76 = vector.broadcast %c7_i32 : i32 to vector<16x1xi32>
    %77 = arith.cmpi eq, %73, %76 : vector<16x1xi32>
    %c8_i32 = arith.constant 8 : i32
    %78 = vector.broadcast %c8_i32 : i32 to vector<16x1xi32>
    %79 = arith.cmpi eq, %73, %78 : vector<16x1xi32>
    %80 = arith.ori %75, %79 : vector<16x1xi1>
    %c15_i32_44 = arith.constant 15 : i32
    %81 = vector.broadcast %c15_i32_44 : i32 to vector<16x1xi32>
    %82 = arith.cmpi eq, %73, %81 : vector<16x1xi32>
    %83 = arith.ori %77, %82 : vector<16x1xi1>
    %cst_45 = arith.constant 0.000000e+00 : f32
    %cst_46 = arith.constant 1.000000e+00 : f32
    %84 = vector.broadcast %cst_45 : f32 to vector<16x1xf32>
    %85 = vector.broadcast %cst_46 : f32 to vector<16x1xf32>
    %86 = arith.select %80, %84, %85 : vector<16x1xi1>, vector<16x1xf32>
    %cst_47 = arith.constant 0.000000e+00 : f32
    %cst_48 = arith.constant 1.000000e+00 : f32
    %87 = vector.broadcast %cst_47 : f32 to vector<16x1xf32>
    %88 = vector.broadcast %cst_48 : f32 to vector<16x1xf32>
    %89 = arith.select %83, %87, %88 : vector<16x1xi1>, vector<16x1xf32>
    %cst_49 = arith.constant 0.000000e+00 : f32
    %90 = vector.broadcast %cst_49 : f32 to vector<1x8xf32>
    %c0_50 = arith.constant 0 : index
    %c0_51 = arith.constant 0 : index
    %91 = vector.load %arg30[%c0_50, %c0_51] : memref<40x32xf32, #tpu.memory_space<vmem>>, vector<1x8xf32>
    tpu.vector_store %arg30[%c0_50, %c0_51], %90 {strides = array<i32>} : memref<40x32xf32, #tpu.memory_space<vmem>>, vector<1x8xf32>,
    %c17 = arith.constant 17 : index
    %c0_52 = arith.constant 0 : index
    %92 = vector.load %arg30[%c17, %c0_52] : memref<40x32xf32, #tpu.memory_space<vmem>>, vector<1x8xf32>
    tpu.vector_store %arg30[%c17, %c0_52], %90 {strides = array<i32>} : memref<40x32xf32, #tpu.memory_space<vmem>>, vector<1x8xf32>,
    %c1_53 = arith.constant 1 : index
    %c0_54 = arith.constant 0 : index
    %93 = vector.load %arg30[%c1_53, %c0_54] : memref<40x32xf32, #tpu.memory_space<vmem>>, vector<16x8xf32>
    tpu.vector_store %arg30[%c1_53, %c0_54], %72 {strides = array<i32>} : memref<40x32xf32, #tpu.memory_space<vmem>>, vector<16x8xf32>,
    %c0_55 = arith.constant 0 : index
    %c0_56 = arith.constant 0 : index
    %94 = vector.load %arg30[%c0_55, %c0_56] : memref<40x32xf32, #tpu.memory_space<vmem>>, vector<16x8xf32>
    %c2_57 = arith.constant 2 : index
    %c0_58 = arith.constant 0 : index
    %95 = vector.load %arg30[%c2_57, %c0_58] : memref<40x32xf32, #tpu.memory_space<vmem>>, vector<16x8xf32>
    %96 = vector.broadcast %86 : vector<16x1xf32> to vector<16x8xf32>
    %97 = arith.mulf %94, %96 : vector<16x8xf32>
    %c0_59 = arith.constant 0 : index
    %c0_60 = arith.constant 0 : index
    %c0_61 = arith.constant 0 : index
    %98 = vector.load %arg5[%c0_59, %c0_60, %c0_61] : memref<3x8x16xf32, #tpu.memory_space<vmem>>, vector<1x8x16xf32>
    %99 = vector.shape_cast %98 : vector<1x8x16xf32> to vector<8x16xf32>
    %cst_62 = arith.constant dense<0.000000e+00> : vector<16x16xf32>
    %100 = tpu.matmul %97, %99, %cst_62 {dimension_numbers = #tpu.dot_dimension_numbers<[1], [0], [0], [1], [0, 0, 1, 1], [], []>} : vector<16x8xf32>, vector<8x16xf32>, vector<16x16xf32> -> vector<16x16xf32>
    %c1_63 = arith.constant 1 : index
    %c0_64 = arith.constant 0 : index
    %c0_65 = arith.constant 0 : index
    %101 = vector.load %arg5[%c1_63, %c0_64, %c0_65] : memref<3x8x16xf32, #tpu.memory_space<vmem>>, vector<1x8x16xf32>
    %102 = vector.shape_cast %101 : vector<1x8x16xf32> to vector<8x16xf32>
    %cst_66 = arith.constant dense<0.000000e+00> : vector<16x16xf32>
    %103 = tpu.matmul %72, %102, %cst_66 {dimension_numbers = #tpu.dot_dimension_numbers<[1], [0], [0], [1], [0, 0, 1, 1], [], []>} : vector<16x8xf32>, vector<8x16xf32>, vector<16x16xf32> -> vector<16x16xf32>
    %104 = arith.addf %100, %103 : vector<16x16xf32>
    %105 = vector.broadcast %89 : vector<16x1xf32> to vector<16x8xf32>
    %106 = arith.mulf %95, %105 : vector<16x8xf32>
    %c2_67 = arith.constant 2 : index
    %c0_68 = arith.constant 0 : index
    %c0_69 = arith.constant 0 : index
    %107 = vector.load %arg5[%c2_67, %c0_68, %c0_69] : memref<3x8x16xf32, #tpu.memory_space<vmem>>, vector<1x8x16xf32>
    %108 = vector.shape_cast %107 : vector<1x8x16xf32> to vector<8x16xf32>
    %cst_70 = arith.constant dense<0.000000e+00> : vector<16x16xf32>
    %109 = tpu.matmul %106, %108, %cst_70 {dimension_numbers = #tpu.dot_dimension_numbers<[1], [0], [0], [1], [0, 0, 1, 1], [], []>} : vector<16x8xf32>, vector<8x16xf32>, vector<16x16xf32> -> vector<16x16xf32>
    %110 = arith.addf %104, %109 : vector<16x16xf32>
    %c0_71 = arith.constant 0 : index
    %c0_72 = arith.constant 0 : index
    %111 = vector.load %arg6[%c0_71, %c0_72] : memref<1x16xf32, #tpu.memory_space<vmem>>, vector<1x16xf32>
    %112 = vector.broadcast %111 : vector<1x16xf32> to vector<16x16xf32>
    %113 = arith.addf %110, %112 : vector<16x16xf32>
    %cst_73 = arith.constant 0.000000e+00 : f32
    %114 = vector.broadcast %cst_73 : f32 to vector<16x16xf32>
    %115 = arith.maximumf %113, %114 : vector<16x16xf32>
    %c0_74 = arith.constant 0 : index
    %c0_75 = arith.constant 0 : index
    %116 = vector.load %arg30[%c0_74, %c0_75] : memref<40x32xf32, #tpu.memory_space<vmem>>, vector<16x16xf32>
    tpu.vector_store %arg30[%c0_74, %c0_75], %115 {strides = array<i32>} : memref<40x32xf32, #tpu.memory_space<vmem>>, vector<16x16xf32>,
    %c0_76 = arith.constant 0 : index
    %c0_77 = arith.constant 0 : index
    %117 = tpu.strided_load %arg30[%c0_76, %c0_77] {strides = array<i32: 2, 1>} : memref<40x32xf32, #tpu.memory_space<vmem>>, vector<8x16xf32>
    %c1_78 = arith.constant 1 : index
    %c0_79 = arith.constant 0 : index
    %118 = tpu.strided_load %arg30[%c1_78, %c0_79] {strides = array<i32: 2, 1>} : memref<40x32xf32, #tpu.memory_space<vmem>>, vector<8x16xf32>
    %119 = arith.maximumf %117, %118 : vector<8x16xf32>
    %cst_80 = arith.constant dense<0.000000e+00> : vector<16xf32>
    %120 = vector.multi_reduction <add>, %119, %cst_80 [0] : vector<8x16xf32> to vector<16xf32>
    %121 = vector.shape_cast %120 : vector<16xf32> to vector<1x16xf32>
    %cst_81 = arith.constant 1.250000e-01 : f32
    %122 = vector.broadcast %cst_81 : f32 to vector<1x16xf32>
    %123 = arith.mulf %121, %122 : vector<1x16xf32>
    %124 = arith.mulf %119, %119 : vector<8x16xf32>
    %cst_82 = arith.constant dense<0.000000e+00> : vector<16xf32>
    %125 = vector.multi_reduction <add>, %124, %cst_82 [0] : vector<8x16xf32> to vector<16xf32>
    %126 = vector.shape_cast %125 : vector<16xf32> to vector<1x16xf32>
    %cst_83 = arith.constant 1.250000e-01 : f32
    %127 = vector.broadcast %cst_83 : f32 to vector<1x16xf32>
    %128 = arith.mulf %126, %127 : vector<1x16xf32>
    %129 = arith.mulf %123, %123 : vector<1x16xf32>
    %130 = arith.subf %128, %129 : vector<1x16xf32>
    %cst_84 = arith.constant 0.000000e+00 : f32
    %131 = vector.broadcast %cst_84 : f32 to vector<1x16xf32>
    %132 = arith.maximumf %130, %131 : vector<1x16xf32>
    %c0_85 = arith.constant 0 : index
    %c0_86 = arith.constant 0 : index
    %133 = vector.load %arg7[%c0_85, %c0_86] : memref<1x16xf32, #tpu.memory_space<vmem>>, vector<1x16xf32>
    %cst_87 = arith.constant 9.99999974E-6 : f32
    %134 = vector.broadcast %cst_87 : f32 to vector<1x16xf32>
    %135 = arith.addf %132, %134 : vector<1x16xf32>
    %136 = math.rsqrt %135 : vector<1x16xf32>
    %137 = arith.mulf %133, %136 : vector<1x16xf32>
    %c0_88 = arith.constant 0 : index
    %c0_89 = arith.constant 0 : index
    %138 = vector.load %arg8[%c0_88, %c0_89] : memref<1x16xf32, #tpu.memory_space<vmem>>, vector<1x16xf32>
    %139 = arith.mulf %123, %137 : vector<1x16xf32>
    %140 = arith.subf %138, %139 : vector<1x16xf32>
    %141 = vector.broadcast %137 : vector<1x16xf32> to vector<8x16xf32>
    %142 = arith.mulf %119, %141 : vector<8x16xf32>
    %143 = vector.broadcast %140 : vector<1x16xf32> to vector<8x16xf32>
    %144 = arith.addf %142, %143 : vector<8x16xf32>
    %145 = tpu.iota {dimensions = array<i32: 0>} : vector<8x1xi32>
    %c0_i32_90 = arith.constant 0 : i32
    %146 = vector.broadcast %c0_i32_90 : i32 to vector<8x1xi32>
    %147 = arith.cmpi eq, %145, %146 : vector<8x1xi32>
    %c3_i32 = arith.constant 3 : i32
    %148 = vector.broadcast %c3_i32 : i32 to vector<8x1xi32>
    %149 = arith.cmpi eq, %145, %148 : vector<8x1xi32>
    %c4_i32 = arith.constant 4 : i32
    %150 = vector.broadcast %c4_i32 : i32 to vector<8x1xi32>
    %151 = arith.cmpi eq, %145, %150 : vector<8x1xi32>
    %152 = arith.ori %147, %151 : vector<8x1xi1>
    %c7_i32_91 = arith.constant 7 : i32
    %153 = vector.broadcast %c7_i32_91 : i32 to vector<8x1xi32>
    %154 = arith.cmpi eq, %145, %153 : vector<8x1xi32>
    %155 = arith.ori %149, %154 : vector<8x1xi1>
    %cst_92 = arith.constant 0.000000e+00 : f32
    %cst_93 = arith.constant 1.000000e+00 : f32
    %156 = vector.broadcast %cst_92 : f32 to vector<8x1xf32>
    %157 = vector.broadcast %cst_93 : f32 to vector<8x1xf32>
    %158 = arith.select %152, %156, %157 : vector<8x1xi1>, vector<8x1xf32>
    %cst_94 = arith.constant 0.000000e+00 : f32
    %cst_95 = arith.constant 1.000000e+00 : f32
    %159 = vector.broadcast %cst_94 : f32 to vector<8x1xf32>
    %160 = vector.broadcast %cst_95 : f32 to vector<8x1xf32>
    %161 = arith.select %155, %159, %160 : vector<8x1xi1>, vector<8x1xf32>
    %cst_96 = arith.constant 0.000000e+00 : f32
    %162 = vector.broadcast %cst_96 : f32 to vector<1x16xf32>
    %c0_97 = arith.constant 0 : index
    %c0_98 = arith.constant 0 : index
    %163 = vector.load %arg30[%c0_97, %c0_98] : memref<40x32xf32, #tpu.memory_space<vmem>>, vector<1x16xf32>
    tpu.vector_store %arg30[%c0_97, %c0_98], %162 {strides = array<i32>} : memref<40x32xf32, #tpu.memory_space<vmem>>, vector<1x16xf32>,
    %c9 = arith.constant 9 : index
    %c0_99 = arith.constant 0 : index
    %164 = vector.load %arg30[%c9, %c0_99] : memref<40x32xf32, #tpu.memory_space<vmem>>, vector<1x16xf32>
    tpu.vector_store %arg30[%c9, %c0_99], %162 {strides = array<i32>} : memref<40x32xf32, #tpu.memory_space<vmem>>, vector<1x16xf32>,
    %c1_100 = arith.constant 1 : index
    %c0_101 = arith.constant 0 : index
    %165 = vector.load %arg30[%c1_100, %c0_101] : memref<40x32xf32, #tpu.memory_space<vmem>>, vector<8x16xf32>
    tpu.vector_store %arg30[%c1_100, %c0_101], %144 {strides = array<i32>} : memref<40x32xf32, #tpu.memory_space<vmem>>, vector<8x16xf32>,
    %c0_102 = arith.constant 0 : index
    %c0_103 = arith.constant 0 : index
    %166 = vector.load %arg30[%c0_102, %c0_103] : memref<40x32xf32, #tpu.memory_space<vmem>>, vector<8x16xf32>
    %c2_104 = arith.constant 2 : index
    %c0_105 = arith.constant 0 : index
    %167 = vector.load %arg30[%c2_104, %c0_105] : memref<40x32xf32, #tpu.memory_space<vmem>>, vector<8x16xf32>
    %168 = vector.broadcast %158 : vector<8x1xf32> to vector<8x16xf32>
    %169 = arith.mulf %166, %168 : vector<8x16xf32>
    %c0_106 = arith.constant 0 : index
    %c0_107 = arith.constant 0 : index
    %c0_108 = arith.constant 0 : index
    %170 = vector.load %arg9[%c0_106, %c0_107, %c0_108] : memref<3x16x32xf32, #tpu.memory_space<vmem>>, vector<1x16x32xf32>
    %171 = vector.shape_cast %170 : vector<1x16x32xf32> to vector<16x32xf32>
    %cst_109 = arith.constant dense<0.000000e+00> : vector<8x32xf32>
    %172 = tpu.matmul %169, %171, %cst_109 {dimension_numbers = #tpu.dot_dimension_numbers<[1], [0], [0], [1], [0, 0, 1, 1], [], []>} : vector<8x16xf32>, vector<16x32xf32>, vector<8x32xf32> -> vector<8x32xf32>
    %c1_110 = arith.constant 1 : index
    %c0_111 = arith.constant 0 : index
    %c0_112 = arith.constant 0 : index
    %173 = vector.load %arg9[%c1_110, %c0_111, %c0_112] : memref<3x16x32xf32, #tpu.memory_space<vmem>>, vector<1x16x32xf32>
    %174 = vector.shape_cast %173 : vector<1x16x32xf32> to vector<16x32xf32>
    %cst_113 = arith.constant dense<0.000000e+00> : vector<8x32xf32>
    %175 = tpu.matmul %144, %174, %cst_113 {dimension_numbers = #tpu.dot_dimension_numbers<[1], [0], [0], [1], [0, 0, 1, 1], [], []>} : vector<8x16xf32>, vector<16x32xf32>, vector<8x32xf32> -> vector<8x32xf32>
    %176 = arith.addf %172, %175 : vector<8x32xf32>
    %177 = vector.broadcast %161 : vector<8x1xf32> to vector<8x16xf32>
    %178 = arith.mulf %167, %177 : vector<8x16xf32>
    %c2_114 = arith.constant 2 : index
    %c0_115 = arith.constant 0 : index
    %c0_116 = arith.constant 0 : index
    %179 = vector.load %arg9[%c2_114, %c0_115, %c0_116] : memref<3x16x32xf32, #tpu.memory_space<vmem>>, vector<1x16x32xf32>
    %180 = vector.shape_cast %179 : vector<1x16x32xf32> to vector<16x32xf32>
    %cst_117 = arith.constant dense<0.000000e+00> : vector<8x32xf32>
    %181 = tpu.matmul %178, %180, %cst_117 {dimension_numbers = #tpu.dot_dimension_numbers<[1], [0], [0], [1], [0, 0, 1, 1], [], []>} : vector<8x16xf32>, vector<16x32xf32>, vector<8x32xf32> -> vector<8x32xf32>
    %182 = arith.addf %176, %181 : vector<8x32xf32>
    %c0_118 = arith.constant 0 : index
    %c0_119 = arith.constant 0 : index
    %183 = vector.load %arg10[%c0_118, %c0_119] : memref<1x32xf32, #tpu.memory_space<vmem>>, vector<1x32xf32>
    %184 = vector.broadcast %183 : vector<1x32xf32> to vector<8x32xf32>
    %185 = arith.addf %182, %184 : vector<8x32xf32>
    %cst_120 = arith.constant 0.000000e+00 : f32
    %186 = vector.broadcast %cst_120 : f32 to vector<8x32xf32>
    %187 = arith.maximumf %185, %186 : vector<8x32xf32>
    %cst_121 = arith.constant dense<0.000000e+00> : vector<32xf32>
    %188 = vector.multi_reduction <add>, %187, %cst_121 [0] : vector<8x32xf32> to vector<32xf32>
    %189 = vector.shape_cast %188 : vector<32xf32> to vector<1x32xf32>
    %cst_122 = arith.constant 1.250000e-01 : f32
    %190 = vector.broadcast %cst_122 : f32 to vector<1x32xf32>
    %191 = arith.mulf %189, %190 : vector<1x32xf32>
    %192 = arith.mulf %187, %187 : vector<8x32xf32>
    %cst_123 = arith.constant dense<0.000000e+00> : vector<32xf32>
    %193 = vector.multi_reduction <add>, %192, %cst_123 [0] : vector<8x32xf32> to vector<32xf32>
    %194 = vector.shape_cast %193 : vector<32xf32> to vector<1x32xf32>
    %cst_124 = arith.constant 1.250000e-01 : f32
    %195 = vector.broadcast %cst_124 : f32 to vector<1x32xf32>
    %196 = arith.mulf %194, %195 : vector<1x32xf32>
    %197 = arith.mulf %191, %191 : vector<1x32xf32>
    %198 = arith.subf %196, %197 : vector<1x32xf32>
    %cst_125 = arith.constant 0.000000e+00 : f32
    %199 = vector.broadcast %cst_125 : f32 to vector<1x32xf32>
    %200 = arith.maximumf %198, %199 : vector<1x32xf32>
    %c0_126 = arith.constant 0 : index
    %c0_127 = arith.constant 0 : index
    %201 = vector.load %arg11[%c0_126, %c0_127] : memref<1x32xf32, #tpu.memory_space<vmem>>, vector<1x32xf32>
    %cst_128 = arith.constant 9.99999974E-6 : f32
    %202 = vector.broadcast %cst_128 : f32 to vector<1x32xf32>
    %203 = arith.addf %200, %202 : vector<1x32xf32>
    %204 = math.rsqrt %203 : vector<1x32xf32>
    %205 = arith.mulf %201, %204 : vector<1x32xf32>
    %c0_129 = arith.constant 0 : index
    %c0_130 = arith.constant 0 : index
    %206 = vector.load %arg12[%c0_129, %c0_130] : memref<1x32xf32, #tpu.memory_space<vmem>>, vector<1x32xf32>
    %207 = arith.mulf %191, %205 : vector<1x32xf32>
    %208 = arith.subf %206, %207 : vector<1x32xf32>
    %209 = vector.broadcast %205 : vector<1x32xf32> to vector<8x32xf32>
    %210 = arith.mulf %187, %209 : vector<8x32xf32>
    %211 = vector.broadcast %208 : vector<1x32xf32> to vector<8x32xf32>
    %212 = arith.addf %210, %211 : vector<8x32xf32>
    %cst_131 = arith.constant 0.000000e+00 : f32
    %213 = vector.broadcast %cst_131 : f32 to vector<1x32xf32>
    %c0_132 = arith.constant 0 : index
    %c0_133 = arith.constant 0 : index
    %214 = vector.load %arg30[%c0_132, %c0_133] : memref<40x32xf32, #tpu.memory_space<vmem>>, vector<1x32xf32>
    tpu.vector_store %arg30[%c0_132, %c0_133], %213 {strides = array<i32>} : memref<40x32xf32, #tpu.memory_space<vmem>>, vector<1x32xf32>,
    %c9_134 = arith.constant 9 : index
    %c0_135 = arith.constant 0 : index
    %215 = vector.load %arg30[%c9_134, %c0_135] : memref<40x32xf32, #tpu.memory_space<vmem>>, vector<1x32xf32>
    tpu.vector_store %arg30[%c9_134, %c0_135], %213 {strides = array<i32>} : memref<40x32xf32, #tpu.memory_space<vmem>>, vector<1x32xf32>,
    %c1_136 = arith.constant 1 : index
    %c0_137 = arith.constant 0 : index
    %216 = vector.load %arg30[%c1_136, %c0_137] : memref<40x32xf32, #tpu.memory_space<vmem>>, vector<8x32xf32>
    tpu.vector_store %arg30[%c1_136, %c0_137], %212 {strides = array<i32>} : memref<40x32xf32, #tpu.memory_space<vmem>>, vector<8x32xf32>,
    %c0_138 = arith.constant 0 : index
    %c0_139 = arith.constant 0 : index
    %217 = vector.load %arg30[%c0_138, %c0_139] : memref<40x32xf32, #tpu.memory_space<vmem>>, vector<8x32xf32>
    %c2_140 = arith.constant 2 : index
    %c0_141 = arith.constant 0 : index
    %218 = vector.load %arg30[%c2_140, %c0_141] : memref<40x32xf32, #tpu.memory_space<vmem>>, vector<8x32xf32>
    %219 = vector.broadcast %158 : vector<8x1xf32> to vector<8x32xf32>
    %220 = arith.mulf %217, %219 : vector<8x32xf32>
    %c0_142 = arith.constant 0 : index
    %c0_143 = arith.constant 0 : index
    %c0_144 = arith.constant 0 : index
    %221 = vector.load %arg13[%c0_142, %c0_143, %c0_144] : memref<3x32x16xf32, #tpu.memory_space<vmem>>, vector<1x32x16xf32>
    %222 = vector.shape_cast %221 : vector<1x32x16xf32> to vector<32x16xf32>
    %cst_145 = arith.constant dense<0.000000e+00> : vector<8x16xf32>
    %223 = tpu.matmul %220, %222, %cst_145 {dimension_numbers = #tpu.dot_dimension_numbers<[1], [0], [0], [1], [0, 0, 1, 1], [], []>} : vector<8x32xf32>, vector<32x16xf32>, vector<8x16xf32> -> vector<8x16xf32>
    %c1_146 = arith.constant 1 : index
    %c0_147 = arith.constant 0 : index
    %c0_148 = arith.constant 0 : index
    %224 = vector.load %arg13[%c1_146, %c0_147, %c0_148] : memref<3x32x16xf32, #tpu.memory_space<vmem>>, vector<1x32x16xf32>
    %225 = vector.shape_cast %224 : vector<1x32x16xf32> to vector<32x16xf32>
    %cst_149 = arith.constant dense<0.000000e+00> : vector<8x16xf32>
    %226 = tpu.matmul %212, %225, %cst_149 {dimension_numbers = #tpu.dot_dimension_numbers<[1], [0], [0], [1], [0, 0, 1, 1], [], []>} : vector<8x32xf32>, vector<32x16xf32>, vector<8x16xf32> -> vector<8x16xf32>
    %227 = arith.addf %223, %226 : vector<8x16xf32>
    %228 = vector.broadcast %161 : vector<8x1xf32> to vector<8x32xf32>
    %229 = arith.mulf %218, %228 : vector<8x32xf32>
    %c2_150 = arith.constant 2 : index
    %c0_151 = arith.constant 0 : index
    %c0_152 = arith.constant 0 : index
    %230 = vector.load %arg13[%c2_150, %c0_151, %c0_152] : memref<3x32x16xf32, #tpu.memory_space<vmem>>, vector<1x32x16xf32>
    %231 = vector.shape_cast %230 : vector<1x32x16xf32> to vector<32x16xf32>
    %cst_153 = arith.constant dense<0.000000e+00> : vector<8x16xf32>
    %232 = tpu.matmul %229, %231, %cst_153 {dimension_numbers = #tpu.dot_dimension_numbers<[1], [0], [0], [1], [0, 0, 1, 1], [], []>} : vector<8x32xf32>, vector<32x16xf32>, vector<8x16xf32> -> vector<8x16xf32>
    %233 = arith.addf %227, %232 : vector<8x16xf32>
    %c0_154 = arith.constant 0 : index
    %c0_155 = arith.constant 0 : index
    %234 = vector.load %arg14[%c0_154, %c0_155] : memref<1x16xf32, #tpu.memory_space<vmem>>, vector<1x16xf32>
    %235 = vector.broadcast %234 : vector<1x16xf32> to vector<8x16xf32>
    %236 = arith.addf %233, %235 : vector<8x16xf32>
    %cst_156 = arith.constant 0.000000e+00 : f32
    %237 = vector.broadcast %cst_156 : f32 to vector<8x16xf32>
    %238 = arith.maximumf %236, %237 : vector<8x16xf32>
    %cst_157 = arith.constant 0.000000e+00 : f32
    %239 = vector.broadcast %cst_157 : f32 to vector<1x16xf32>
    %c0_158 = arith.constant 0 : index
    %c0_159 = arith.constant 0 : index
    %240 = vector.load %arg30[%c0_158, %c0_159] : memref<40x32xf32, #tpu.memory_space<vmem>>, vector<1x16xf32>
    tpu.vector_store %arg30[%c0_158, %c0_159], %239 {strides = array<i32>} : memref<40x32xf32, #tpu.memory_space<vmem>>, vector<1x16xf32>,
    %c9_160 = arith.constant 9 : index
    %c0_161 = arith.constant 0 : index
    %241 = vector.load %arg30[%c9_160, %c0_161] : memref<40x32xf32, #tpu.memory_space<vmem>>, vector<1x16xf32>
    tpu.vector_store %arg30[%c9_160, %c0_161], %239 {strides = array<i32>} : memref<40x32xf32, #tpu.memory_space<vmem>>, vector<1x16xf32>,
    %c1_162 = arith.constant 1 : index
    %c0_163 = arith.constant 0 : index
    %242 = vector.load %arg30[%c1_162, %c0_163] : memref<40x32xf32, #tpu.memory_space<vmem>>, vector<8x16xf32>
    tpu.vector_store %arg30[%c1_162, %c0_163], %238 {strides = array<i32>} : memref<40x32xf32, #tpu.memory_space<vmem>>, vector<8x16xf32>,
    %c0_164 = arith.constant 0 : index
    %c0_165 = arith.constant 0 : index
    %243 = vector.load %arg30[%c0_164, %c0_165] : memref<40x32xf32, #tpu.memory_space<vmem>>, vector<8x16xf32>
    %c2_166 = arith.constant 2 : index
    %c0_167 = arith.constant 0 : index
    %244 = vector.load %arg30[%c2_166, %c0_167] : memref<40x32xf32, #tpu.memory_space<vmem>>, vector<8x16xf32>
    %c0_168 = arith.constant 0 : index
    %c0_169 = arith.constant 0 : index
    %245 = vector.load %arg15[%c0_168, %c0_169] : memref<8x6xf32, #tpu.memory_space<vmem>>, vector<8x6xf32>
    %246 = vector.extract_strided_slice %245 {offsets = [0, 0], sizes = [8, 1], strides = [1, 1]} : vector<8x6xf32> to vector<8x1xf32>
    %247 = vector.broadcast %246 : vector<8x1xf32> to vector<8x16xf32>
    %248 = arith.mulf %247, %243 : vector<8x16xf32>
    %249 = vector.extract_strided_slice %245 {offsets = [0, 1], sizes = [8, 1], strides = [1, 1]} : vector<8x6xf32> to vector<8x1xf32>
    %250 = vector.broadcast %249 : vector<8x1xf32> to vector<8x16xf32>
    %251 = arith.mulf %250, %238 : vector<8x16xf32>
    %252 = arith.addf %248, %251 : vector<8x16xf32>
    %253 = vector.extract_strided_slice %245 {offsets = [0, 2], sizes = [8, 1], strides = [1, 1]} : vector<8x6xf32> to vector<8x1xf32>
    %254 = vector.broadcast %253 : vector<8x1xf32> to vector<8x16xf32>
    %255 = arith.mulf %254, %244 : vector<8x16xf32>
    %256 = arith.addf %252, %255 : vector<8x16xf32>
    %257 = vector.extract_strided_slice %245 {offsets = [0, 3], sizes = [8, 1], strides = [1, 1]} : vector<8x6xf32> to vector<8x1xf32>
    %258 = vector.broadcast %257 : vector<8x1xf32> to vector<8x16xf32>
    %259 = arith.mulf %258, %243 : vector<8x16xf32>
    %260 = vector.extract_strided_slice %245 {offsets = [0, 4], sizes = [8, 1], strides = [1, 1]} : vector<8x6xf32> to vector<8x1xf32>
    %261 = vector.broadcast %260 : vector<8x1xf32> to vector<8x16xf32>
    %262 = arith.mulf %261, %238 : vector<8x16xf32>
    %263 = arith.addf %259, %262 : vector<8x16xf32>
    %264 = vector.extract_strided_slice %245 {offsets = [0, 5], sizes = [8, 1], strides = [1, 1]} : vector<8x6xf32> to vector<8x1xf32>
    %265 = vector.broadcast %264 : vector<8x1xf32> to vector<8x16xf32>
    %266 = arith.mulf %265, %244 : vector<8x16xf32>
    %267 = arith.addf %263, %266 : vector<8x16xf32>
    %c0_170 = arith.constant 0 : index
    %c0_171 = arith.constant 0 : index
    %268 = tpu.strided_load %arg30[%c0_170, %c0_171] {strides = array<i32: 2, 1>} : memref<40x32xf32, #tpu.memory_space<vmem>>, vector<8x16xf32>
    tpu.strided_store %arg30[%c0_170, %c0_171], %256 {strides = array<i32: 2, 1>} : memref<40x32xf32, #tpu.memory_space<vmem>>, vector<8x16xf32>
    %c1_172 = arith.constant 1 : index
    %c0_173 = arith.constant 0 : index
    %269 = tpu.strided_load %arg30[%c1_172, %c0_173] {strides = array<i32: 2, 1>} : memref<40x32xf32, #tpu.memory_space<vmem>>, vector<8x16xf32>
    tpu.strided_store %arg30[%c1_172, %c0_173], %267 {strides = array<i32: 2, 1>} : memref<40x32xf32, #tpu.memory_space<vmem>>, vector<8x16xf32>
    %c0_174 = arith.constant 0 : index
    %c0_175 = arith.constant 0 : index
    %270 = vector.load %arg30[%c0_174, %c0_175] : memref<40x32xf32, #tpu.memory_space<vmem>>, vector<16x16xf32>
    %cst_176 = arith.constant 0.000000e+00 : f32
    %271 = vector.broadcast %cst_176 : f32 to vector<1x16xf32>
    %c0_177 = arith.constant 0 : index
    %c0_178 = arith.constant 0 : index
    %272 = vector.load %arg30[%c0_177, %c0_178] : memref<40x32xf32, #tpu.memory_space<vmem>>, vector<1x16xf32>
    tpu.vector_store %arg30[%c0_177, %c0_178], %271 {strides = array<i32>} : memref<40x32xf32, #tpu.memory_space<vmem>>, vector<1x16xf32>,
    %c17_179 = arith.constant 17 : index
    %c0_180 = arith.constant 0 : index
    %273 = vector.load %arg30[%c17_179, %c0_180] : memref<40x32xf32, #tpu.memory_space<vmem>>, vector<1x16xf32>
    tpu.vector_store %arg30[%c17_179, %c0_180], %271 {strides = array<i32>} : memref<40x32xf32, #tpu.memory_space<vmem>>, vector<1x16xf32>,
    %c1_181 = arith.constant 1 : index
    %c0_182 = arith.constant 0 : index
    %274 = vector.load %arg30[%c1_181, %c0_182] : memref<40x32xf32, #tpu.memory_space<vmem>>, vector<16x16xf32>
    tpu.vector_store %arg30[%c1_181, %c0_182], %270 {strides = array<i32>} : memref<40x32xf32, #tpu.memory_space<vmem>>, vector<16x16xf32>,
    %c0_183 = arith.constant 0 : index
    %c0_184 = arith.constant 0 : index
    %275 = vector.load %arg30[%c0_183, %c0_184] : memref<40x32xf32, #tpu.memory_space<vmem>>, vector<16x16xf32>
    %c2_185 = arith.constant 2 : index
    %c0_186 = arith.constant 0 : index
    %276 = vector.load %arg30[%c2_185, %c0_186] : memref<40x32xf32, #tpu.memory_space<vmem>>, vector<16x16xf32>
    %277 = vector.broadcast %86 : vector<16x1xf32> to vector<16x16xf32>
    %278 = arith.mulf %275, %277 : vector<16x16xf32>
    %c0_187 = arith.constant 0 : index
    %c0_188 = arith.constant 0 : index
    %c0_189 = arith.constant 0 : index
    %279 = vector.load %arg16[%c0_187, %c0_188, %c0_189] : memref<3x16x16xf32, #tpu.memory_space<vmem>>, vector<1x16x16xf32>
    %280 = vector.shape_cast %279 : vector<1x16x16xf32> to vector<16x16xf32>
    %cst_190 = arith.constant dense<0.000000e+00> : vector<16x16xf32>
    %281 = tpu.matmul %278, %280, %cst_190 {dimension_numbers = #tpu.dot_dimension_numbers<[1], [0], [0], [1], [0, 0, 1, 1], [], []>} : vector<16x16xf32>, vector<16x16xf32>, vector<16x16xf32> -> vector<16x16xf32>
    %c1_191 = arith.constant 1 : index
    %c0_192 = arith.constant 0 : index
    %c0_193 = arith.constant 0 : index
    %282 = vector.load %arg16[%c1_191, %c0_192, %c0_193] : memref<3x16x16xf32, #tpu.memory_space<vmem>>, vector<1x16x16xf32>
    %283 = vector.shape_cast %282 : vector<1x16x16xf32> to vector<16x16xf32>
    %cst_194 = arith.constant dense<0.000000e+00> : vector<16x16xf32>
    %284 = tpu.matmul %270, %283, %cst_194 {dimension_numbers = #tpu.dot_dimension_numbers<[1], [0], [0], [1], [0, 0, 1, 1], [], []>} : vector<16x16xf32>, vector<16x16xf32>, vector<16x16xf32> -> vector<16x16xf32>
    %285 = arith.addf %281, %284 : vector<16x16xf32>
    %286 = vector.broadcast %89 : vector<16x1xf32> to vector<16x16xf32>
    %287 = arith.mulf %276, %286 : vector<16x16xf32>
    %c2_195 = arith.constant 2 : index
    %c0_196 = arith.constant 0 : index
    %c0_197 = arith.constant 0 : index
    %288 = vector.load %arg16[%c2_195, %c0_196, %c0_197] : memref<3x16x16xf32, #tpu.memory_space<vmem>>, vector<1x16x16xf32>
    %289 = vector.shape_cast %288 : vector<1x16x16xf32> to vector<16x16xf32>
    %cst_198 = arith.constant dense<0.000000e+00> : vector<16x16xf32>
    %290 = tpu.matmul %287, %289, %cst_198 {dimension_numbers = #tpu.dot_dimension_numbers<[1], [0], [0], [1], [0, 0, 1, 1], [], []>} : vector<16x16xf32>, vector<16x16xf32>, vector<16x16xf32> -> vector<16x16xf32>
    %291 = arith.addf %285, %290 : vector<16x16xf32>
    %cst_199 = arith.constant 0.000000e+00 : f32
    %292 = vector.broadcast %cst_199 : f32 to vector<1x16xf32>
    %c0_200 = arith.constant 0 : index
    %c0_201 = arith.constant 0 : index
    %293 = vector.load %arg30[%c0_200, %c0_201] : memref<40x32xf32, #tpu.memory_space<vmem>>, vector<1x16xf32>
    tpu.vector_store %arg30[%c0_200, %c0_201], %292 {strides = array<i32>} : memref<40x32xf32, #tpu.memory_space<vmem>>, vector<1x16xf32>,
    %c17_202 = arith.constant 17 : index
    %c0_203 = arith.constant 0 : index
    %294 = vector.load %arg30[%c17_202, %c0_203] : memref<40x32xf32, #tpu.memory_space<vmem>>, vector<1x16xf32>
    tpu.vector_store %arg30[%c17_202, %c0_203], %292 {strides = array<i32>} : memref<40x32xf32, #tpu.memory_space<vmem>>, vector<1x16xf32>,
    %c1_204 = arith.constant 1 : index
    %c0_205 = arith.constant 0 : index
    %295 = vector.load %arg30[%c1_204, %c0_205] : memref<40x32xf32, #tpu.memory_space<vmem>>, vector<16x16xf32>
    tpu.vector_store %arg30[%c1_204, %c0_205], %115 {strides = array<i32>} : memref<40x32xf32, #tpu.memory_space<vmem>>, vector<16x16xf32>,
    %c0_206 = arith.constant 0 : index
    %c0_207 = arith.constant 0 : index
    %296 = vector.load %arg30[%c0_206, %c0_207] : memref<40x32xf32, #tpu.memory_space<vmem>>, vector<16x16xf32>
    %c2_208 = arith.constant 2 : index
    %c0_209 = arith.constant 0 : index
    %297 = vector.load %arg30[%c2_208, %c0_209] : memref<40x32xf32, #tpu.memory_space<vmem>>, vector<16x16xf32>
    %298 = vector.broadcast %86 : vector<16x1xf32> to vector<16x16xf32>
    %299 = arith.mulf %296, %298 : vector<16x16xf32>
    %c0_210 = arith.constant 0 : index
    %c0_211 = arith.constant 0 : index
    %c0_212 = arith.constant 0 : index
    %300 = vector.load %arg17[%c0_210, %c0_211, %c0_212] : memref<3x16x16xf32, #tpu.memory_space<vmem>>, vector<1x16x16xf32>
    %301 = vector.shape_cast %300 : vector<1x16x16xf32> to vector<16x16xf32>
    %cst_213 = arith.constant dense<0.000000e+00> : vector<16x16xf32>
    %302 = tpu.matmul %299, %301, %cst_213 {dimension_numbers = #tpu.dot_dimension_numbers<[1], [0], [0], [1], [0, 0, 1, 1], [], []>} : vector<16x16xf32>, vector<16x16xf32>, vector<16x16xf32> -> vector<16x16xf32>
    %c1_214 = arith.constant 1 : index
    %c0_215 = arith.constant 0 : index
    %c0_216 = arith.constant 0 : index
    %303 = vector.load %arg17[%c1_214, %c0_215, %c0_216] : memref<3x16x16xf32, #tpu.memory_space<vmem>>, vector<1x16x16xf32>
    %304 = vector.shape_cast %303 : vector<1x16x16xf32> to vector<16x16xf32>
    %cst_217 = arith.constant dense<0.000000e+00> : vector<16x16xf32>
    %305 = tpu.matmul %115, %304, %cst_217 {dimension_numbers = #tpu.dot_dimension_numbers<[1], [0], [0], [1], [0, 0, 1, 1], [], []>} : vector<16x16xf32>, vector<16x16xf32>, vector<16x16xf32> -> vector<16x16xf32>
    %306 = arith.addf %302, %305 : vector<16x16xf32>
    %307 = vector.broadcast %89 : vector<16x1xf32> to vector<16x16xf32>
    %308 = arith.mulf %297, %307 : vector<16x16xf32>
    %c2_218 = arith.constant 2 : index
    %c0_219 = arith.constant 0 : index
    %c0_220 = arith.constant 0 : index
    %309 = vector.load %arg17[%c2_218, %c0_219, %c0_220] : memref<3x16x16xf32, #tpu.memory_space<vmem>>, vector<1x16x16xf32>
    %310 = vector.shape_cast %309 : vector<1x16x16xf32> to vector<16x16xf32>
    %cst_221 = arith.constant dense<0.000000e+00> : vector<16x16xf32>
    %311 = tpu.matmul %308, %310, %cst_221 {dimension_numbers = #tpu.dot_dimension_numbers<[1], [0], [0], [1], [0, 0, 1, 1], [], []>} : vector<16x16xf32>, vector<16x16xf32>, vector<16x16xf32> -> vector<16x16xf32>
    %312 = arith.addf %306, %311 : vector<16x16xf32>
    %313 = arith.addf %291, %312 : vector<16x16xf32>
    %c0_222 = arith.constant 0 : index
    %c0_223 = arith.constant 0 : index
    %314 = vector.load %arg18[%c0_222, %c0_223] : memref<1x16xf32, #tpu.memory_space<vmem>>, vector<1x16xf32>
    %315 = vector.broadcast %314 : vector<1x16xf32> to vector<16x16xf32>
    %316 = arith.addf %313, %315 : vector<16x16xf32>
    %cst_224 = arith.constant 0.000000e+00 : f32
    %317 = vector.broadcast %cst_224 : f32 to vector<16x16xf32>
    %318 = arith.maximumf %316, %317 : vector<16x16xf32>
    %cst_225 = arith.constant dense<0.000000e+00> : vector<16xf32>
    %319 = vector.multi_reduction <add>, %318, %cst_225 [0] : vector<16x16xf32> to vector<16xf32>
    %320 = vector.shape_cast %319 : vector<16xf32> to vector<1x16xf32>
    %cst_226 = arith.constant 6.250000e-02 : f32
    %321 = vector.broadcast %cst_226 : f32 to vector<1x16xf32>
    %322 = arith.mulf %320, %321 : vector<1x16xf32>
    %323 = arith.mulf %318, %318 : vector<16x16xf32>
    %cst_227 = arith.constant dense<0.000000e+00> : vector<16xf32>
    %324 = vector.multi_reduction <add>, %323, %cst_227 [0] : vector<16x16xf32> to vector<16xf32>
    %325 = vector.shape_cast %324 : vector<16xf32> to vector<1x16xf32>
    %cst_228 = arith.constant 6.250000e-02 : f32
    %326 = vector.broadcast %cst_228 : f32 to vector<1x16xf32>
    %327 = arith.mulf %325, %326 : vector<1x16xf32>
    %328 = arith.mulf %322, %322 : vector<1x16xf32>
    %329 = arith.subf %327, %328 : vector<1x16xf32>
    %cst_229 = arith.constant 0.000000e+00 : f32
    %330 = vector.broadcast %cst_229 : f32 to vector<1x16xf32>
    %331 = arith.maximumf %329, %330 : vector<1x16xf32>
    %c0_230 = arith.constant 0 : index
    %c0_231 = arith.constant 0 : index
    %332 = vector.load %arg19[%c0_230, %c0_231] : memref<1x16xf32, #tpu.memory_space<vmem>>, vector<1x16xf32>
    %cst_232 = arith.constant 9.99999974E-6 : f32
    %333 = vector.broadcast %cst_232 : f32 to vector<1x16xf32>
    %334 = arith.addf %331, %333 : vector<1x16xf32>
    %335 = math.rsqrt %334 : vector<1x16xf32>
    %336 = arith.mulf %332, %335 : vector<1x16xf32>
    %c0_233 = arith.constant 0 : index
    %c0_234 = arith.constant 0 : index
    %337 = vector.load %arg20[%c0_233, %c0_234] : memref<1x16xf32, #tpu.memory_space<vmem>>, vector<1x16xf32>
    %338 = arith.mulf %322, %336 : vector<1x16xf32>
    %339 = arith.subf %337, %338 : vector<1x16xf32>
    %340 = vector.broadcast %336 : vector<1x16xf32> to vector<16x16xf32>
    %341 = arith.mulf %318, %340 : vector<16x16xf32>
    %342 = vector.broadcast %339 : vector<1x16xf32> to vector<16x16xf32>
    %343 = arith.addf %341, %342 : vector<16x16xf32>
    %cst_235 = arith.constant 0.000000e+00 : f32
    %344 = vector.broadcast %cst_235 : f32 to vector<1x16xf32>
    %c0_236 = arith.constant 0 : index
    %c0_237 = arith.constant 0 : index
    %345 = vector.load %arg30[%c0_236, %c0_237] : memref<40x32xf32, #tpu.memory_space<vmem>>, vector<1x16xf32>
    tpu.vector_store %arg30[%c0_236, %c0_237], %344 {strides = array<i32>} : memref<40x32xf32, #tpu.memory_space<vmem>>, vector<1x16xf32>,
    %c17_238 = arith.constant 17 : index
    %c0_239 = arith.constant 0 : index
    %346 = vector.load %arg30[%c17_238, %c0_239] : memref<40x32xf32, #tpu.memory_space<vmem>>, vector<1x16xf32>
    tpu.vector_store %arg30[%c17_238, %c0_239], %344 {strides = array<i32>} : memref<40x32xf32, #tpu.memory_space<vmem>>, vector<1x16xf32>,
    %c1_240 = arith.constant 1 : index
    %c0_241 = arith.constant 0 : index
    %347 = vector.load %arg30[%c1_240, %c0_241] : memref<40x32xf32, #tpu.memory_space<vmem>>, vector<16x16xf32>
    tpu.vector_store %arg30[%c1_240, %c0_241], %343 {strides = array<i32>} : memref<40x32xf32, #tpu.memory_space<vmem>>, vector<16x16xf32>,
    %c0_242 = arith.constant 0 : index
    %c0_243 = arith.constant 0 : index
    %348 = vector.load %arg30[%c0_242, %c0_243] : memref<40x32xf32, #tpu.memory_space<vmem>>, vector<16x16xf32>
    %c2_244 = arith.constant 2 : index
    %c0_245 = arith.constant 0 : index
    %349 = vector.load %arg30[%c2_244, %c0_245] : memref<40x32xf32, #tpu.memory_space<vmem>>, vector<16x16xf32>
    %350 = vector.broadcast %86 : vector<16x1xf32> to vector<16x16xf32>
    %351 = arith.mulf %348, %350 : vector<16x16xf32>
    %c0_246 = arith.constant 0 : index
    %c0_247 = arith.constant 0 : index
    %c0_248 = arith.constant 0 : index
    %352 = vector.load %arg21[%c0_246, %c0_247, %c0_248] : memref<3x16x8xf32, #tpu.memory_space<vmem>>, vector<1x16x8xf32>
    %353 = vector.shape_cast %352 : vector<1x16x8xf32> to vector<16x8xf32>
    %cst_249 = arith.constant dense<0.000000e+00> : vector<16x8xf32>
    %354 = tpu.matmul %351, %353, %cst_249 {dimension_numbers = #tpu.dot_dimension_numbers<[1], [0], [0], [1], [0, 0, 1, 1], [], []>} : vector<16x16xf32>, vector<16x8xf32>, vector<16x8xf32> -> vector<16x8xf32>
    %c1_250 = arith.constant 1 : index
    %c0_251 = arith.constant 0 : index
    %c0_252 = arith.constant 0 : index
    %355 = vector.load %arg21[%c1_250, %c0_251, %c0_252] : memref<3x16x8xf32, #tpu.memory_space<vmem>>, vector<1x16x8xf32>
    %356 = vector.shape_cast %355 : vector<1x16x8xf32> to vector<16x8xf32>
    %cst_253 = arith.constant dense<0.000000e+00> : vector<16x8xf32>
    %357 = tpu.matmul %343, %356, %cst_253 {dimension_numbers = #tpu.dot_dimension_numbers<[1], [0], [0], [1], [0, 0, 1, 1], [], []>} : vector<16x16xf32>, vector<16x8xf32>, vector<16x8xf32> -> vector<16x8xf32>
    %358 = arith.addf %354, %357 : vector<16x8xf32>
    %359 = vector.broadcast %89 : vector<16x1xf32> to vector<16x16xf32>
    %360 = arith.mulf %349, %359 : vector<16x16xf32>
    %c2_254 = arith.constant 2 : index
    %c0_255 = arith.constant 0 : index
    %c0_256 = arith.constant 0 : index
    %361 = vector.load %arg21[%c2_254, %c0_255, %c0_256] : memref<3x16x8xf32, #tpu.memory_space<vmem>>, vector<1x16x8xf32>
    %362 = vector.shape_cast %361 : vector<1x16x8xf32> to vector<16x8xf32>
    %cst_257 = arith.constant dense<0.000000e+00> : vector<16x8xf32>
    %363 = tpu.matmul %360, %362, %cst_257 {dimension_numbers = #tpu.dot_dimension_numbers<[1], [0], [0], [1], [0, 0, 1, 1], [], []>} : vector<16x16xf32>, vector<16x8xf32>, vector<16x8xf32> -> vector<16x8xf32>
    %364 = arith.addf %358, %363 : vector<16x8xf32>
    %c0_258 = arith.constant 0 : index
    %c0_259 = arith.constant 0 : index
    %365 = vector.load %arg22[%c0_258, %c0_259] : memref<1x8xf32, #tpu.memory_space<vmem>>, vector<1x8xf32>
    %366 = vector.broadcast %365 : vector<1x8xf32> to vector<16x8xf32>
    %367 = arith.addf %364, %366 : vector<16x8xf32>
    %cst_260 = arith.constant 0.000000e+00 : f32
    %368 = vector.broadcast %cst_260 : f32 to vector<16x8xf32>
    %369 = arith.maximumf %367, %368 : vector<16x8xf32>
    %cst_261 = arith.constant 0.000000e+00 : f32
    %370 = vector.broadcast %cst_261 : f32 to vector<1x8xf32>
    %c0_262 = arith.constant 0 : index
    %c0_263 = arith.constant 0 : index
    %371 = vector.load %arg30[%c0_262, %c0_263] : memref<40x32xf32, #tpu.memory_space<vmem>>, vector<1x8xf32>
    tpu.vector_store %arg30[%c0_262, %c0_263], %370 {strides = array<i32>} : memref<40x32xf32, #tpu.memory_space<vmem>>, vector<1x8xf32>,
    %c17_264 = arith.constant 17 : index
    %c0_265 = arith.constant 0 : index
    %372 = vector.load %arg30[%c17_264, %c0_265] : memref<40x32xf32, #tpu.memory_space<vmem>>, vector<1x8xf32>
    tpu.vector_store %arg30[%c17_264, %c0_265], %370 {strides = array<i32>} : memref<40x32xf32, #tpu.memory_space<vmem>>, vector<1x8xf32>,
    %c1_266 = arith.constant 1 : index
    %c0_267 = arith.constant 0 : index
    %373 = vector.load %arg30[%c1_266, %c0_267] : memref<40x32xf32, #tpu.memory_space<vmem>>, vector<16x8xf32>
    tpu.vector_store %arg30[%c1_266, %c0_267], %369 {strides = array<i32>} : memref<40x32xf32, #tpu.memory_space<vmem>>, vector<16x8xf32>,
    %c0_268 = arith.constant 0 : index
    %c0_269 = arith.constant 0 : index
    %374 = vector.load %arg30[%c0_268, %c0_269] : memref<40x32xf32, #tpu.memory_space<vmem>>, vector<16x8xf32>
    %c2_270 = arith.constant 2 : index
    %c0_271 = arith.constant 0 : index
    %375 = vector.load %arg30[%c2_270, %c0_271] : memref<40x32xf32, #tpu.memory_space<vmem>>, vector<16x8xf32>
    %c0_272 = arith.constant 0 : index
    %c0_273 = arith.constant 0 : index
    %376 = vector.load %arg23[%c0_272, %c0_273] : memref<16x6xf32, #tpu.memory_space<vmem>>, vector<16x6xf32>
    %377 = vector.extract_strided_slice %376 {offsets = [0, 0], sizes = [16, 1], strides = [1, 1]} : vector<16x6xf32> to vector<16x1xf32>
    %378 = vector.broadcast %377 : vector<16x1xf32> to vector<16x8xf32>
    %379 = arith.mulf %378, %374 : vector<16x8xf32>
    %380 = vector.extract_strided_slice %376 {offsets = [0, 1], sizes = [16, 1], strides = [1, 1]} : vector<16x6xf32> to vector<16x1xf32>
    %381 = vector.broadcast %380 : vector<16x1xf32> to vector<16x8xf32>
    %382 = arith.mulf %381, %369 : vector<16x8xf32>
    %383 = arith.addf %379, %382 : vector<16x8xf32>
    %384 = vector.extract_strided_slice %376 {offsets = [0, 2], sizes = [16, 1], strides = [1, 1]} : vector<16x6xf32> to vector<16x1xf32>
    %385 = vector.broadcast %384 : vector<16x1xf32> to vector<16x8xf32>
    %386 = arith.mulf %385, %375 : vector<16x8xf32>
    %387 = arith.addf %383, %386 : vector<16x8xf32>
    %388 = vector.extract_strided_slice %376 {offsets = [0, 3], sizes = [16, 1], strides = [1, 1]} : vector<16x6xf32> to vector<16x1xf32>
    %389 = vector.broadcast %388 : vector<16x1xf32> to vector<16x8xf32>
    %390 = arith.mulf %389, %374 : vector<16x8xf32>
    %391 = vector.extract_strided_slice %376 {offsets = [0, 4], sizes = [16, 1], strides = [1, 1]} : vector<16x6xf32> to vector<16x1xf32>
    %392 = vector.broadcast %391 : vector<16x1xf32> to vector<16x8xf32>
    %393 = arith.mulf %392, %369 : vector<16x8xf32>
    %394 = arith.addf %390, %393 : vector<16x8xf32>
    %395 = vector.extract_strided_slice %376 {offsets = [0, 5], sizes = [16, 1], strides = [1, 1]} : vector<16x6xf32> to vector<16x1xf32>
    %396 = vector.broadcast %395 : vector<16x1xf32> to vector<16x8xf32>
    %397 = arith.mulf %396, %375 : vector<16x8xf32>
    %398 = arith.addf %394, %397 : vector<16x8xf32>
    %c0_274 = arith.constant 0 : index
    %c0_275 = arith.constant 0 : index
    %399 = tpu.strided_load %arg30[%c0_274, %c0_275] {strides = array<i32: 2, 1>} : memref<40x32xf32, #tpu.memory_space<vmem>>, vector<16x8xf32>
    tpu.strided_store %arg30[%c0_274, %c0_275], %387 {strides = array<i32: 2, 1>} : memref<40x32xf32, #tpu.memory_space<vmem>>, vector<16x8xf32>
    %c1_276 = arith.constant 1 : index
    %c0_277 = arith.constant 0 : index
    %400 = tpu.strided_load %arg30[%c1_276, %c0_277] {strides = array<i32: 2, 1>} : memref<40x32xf32, #tpu.memory_space<vmem>>, vector<16x8xf32>
    tpu.strided_store %arg30[%c1_276, %c0_277], %398 {strides = array<i32: 2, 1>} : memref<40x32xf32, #tpu.memory_space<vmem>>, vector<16x8xf32>
    %c0_278 = arith.constant 0 : index
    %c0_279 = arith.constant 0 : index
    %401 = vector.load %arg30[%c0_278, %c0_279] : memref<40x32xf32, #tpu.memory_space<vmem>>, vector<32x8xf32>
    %cst_280 = arith.constant 0.000000e+00 : f32
    %402 = vector.broadcast %cst_280 : f32 to vector<1x8xf32>
    %c0_281 = arith.constant 0 : index
    %c0_282 = arith.constant 0 : index
    %403 = vector.load %arg30[%c0_281, %c0_282] : memref<40x32xf32, #tpu.memory_space<vmem>>, vector<1x8xf32>
    tpu.vector_store %arg30[%c0_281, %c0_282], %402 {strides = array<i32>} : memref<40x32xf32, #tpu.memory_space<vmem>>, vector<1x8xf32>,
    %c33_283 = arith.constant 33 : index
    %c0_284 = arith.constant 0 : index
    %404 = vector.load %arg30[%c33_283, %c0_284] : memref<40x32xf32, #tpu.memory_space<vmem>>, vector<1x8xf32>
    tpu.vector_store %arg30[%c33_283, %c0_284], %402 {strides = array<i32>} : memref<40x32xf32, #tpu.memory_space<vmem>>, vector<1x8xf32>,
    %c1_285 = arith.constant 1 : index
    %c0_286 = arith.constant 0 : index
    %405 = vector.load %arg30[%c1_285, %c0_286] : memref<40x32xf32, #tpu.memory_space<vmem>>, vector<32x8xf32>
    tpu.vector_store %arg30[%c1_285, %c0_286], %401 {strides = array<i32>} : memref<40x32xf32, #tpu.memory_space<vmem>>, vector<32x8xf32>,
    %c0_287 = arith.constant 0 : index
    %c0_288 = arith.constant 0 : index
    %406 = vector.load %arg30[%c0_287, %c0_288] : memref<40x32xf32, #tpu.memory_space<vmem>>, vector<32x8xf32>
    %c2_289 = arith.constant 2 : index
    %c0_290 = arith.constant 0 : index
    %407 = vector.load %arg30[%c2_289, %c0_290] : memref<40x32xf32, #tpu.memory_space<vmem>>, vector<32x8xf32>
    %408 = vector.broadcast %14 : vector<32x1xf32> to vector<32x8xf32>
    %409 = arith.mulf %406, %408 : vector<32x8xf32>
    %c0_291 = arith.constant 0 : index
    %c0_292 = arith.constant 0 : index
    %c0_293 = arith.constant 0 : index
    %410 = vector.load %arg24[%c0_291, %c0_292, %c0_293] : memref<3x8x4xf32, #tpu.memory_space<vmem>>, vector<1x8x4xf32>
    %411 = vector.shape_cast %410 : vector<1x8x4xf32> to vector<8x4xf32>
    %cst_294 = arith.constant dense<0.000000e+00> : vector<32x4xf32>
    %412 = tpu.matmul %409, %411, %cst_294 {dimension_numbers = #tpu.dot_dimension_numbers<[1], [0], [0], [1], [0, 0, 1, 1], [], []>} : vector<32x8xf32>, vector<8x4xf32>, vector<32x4xf32> -> vector<32x4xf32>
    %c1_295 = arith.constant 1 : index
    %c0_296 = arith.constant 0 : index
    %c0_297 = arith.constant 0 : index
    %413 = vector.load %arg24[%c1_295, %c0_296, %c0_297] : memref<3x8x4xf32, #tpu.memory_space<vmem>>, vector<1x8x4xf32>
    %414 = vector.shape_cast %413 : vector<1x8x4xf32> to vector<8x4xf32>
    %cst_298 = arith.constant dense<0.000000e+00> : vector<32x4xf32>
    %415 = tpu.matmul %401, %414, %cst_298 {dimension_numbers = #tpu.dot_dimension_numbers<[1], [0], [0], [1], [0, 0, 1, 1], [], []>} : vector<32x8xf32>, vector<8x4xf32>, vector<32x4xf32> -> vector<32x4xf32>
    %416 = arith.addf %412, %415 : vector<32x4xf32>
    %417 = vector.broadcast %17 : vector<32x1xf32> to vector<32x8xf32>
    %418 = arith.mulf %407, %417 : vector<32x8xf32>
    %c2_299 = arith.constant 2 : index
    %c0_300 = arith.constant 0 : index
    %c0_301 = arith.constant 0 : index
    %419 = vector.load %arg24[%c2_299, %c0_300, %c0_301] : memref<3x8x4xf32, #tpu.memory_space<vmem>>, vector<1x8x4xf32>
    %420 = vector.shape_cast %419 : vector<1x8x4xf32> to vector<8x4xf32>
    %cst_302 = arith.constant dense<0.000000e+00> : vector<32x4xf32>
    %421 = tpu.matmul %418, %420, %cst_302 {dimension_numbers = #tpu.dot_dimension_numbers<[1], [0], [0], [1], [0, 0, 1, 1], [], []>} : vector<32x8xf32>, vector<8x4xf32>, vector<32x4xf32> -> vector<32x4xf32>
    %422 = arith.addf %416, %421 : vector<32x4xf32>
    %cst_303 = arith.constant 0.000000e+00 : f32
    %423 = vector.broadcast %cst_303 : f32 to vector<1x8xf32>
    %c0_304 = arith.constant 0 : index
    %c0_305 = arith.constant 0 : index
    %424 = vector.load %arg30[%c0_304, %c0_305] : memref<40x32xf32, #tpu.memory_space<vmem>>, vector<1x8xf32>
    tpu.vector_store %arg30[%c0_304, %c0_305], %423 {strides = array<i32>} : memref<40x32xf32, #tpu.memory_space<vmem>>, vector<1x8xf32>,
    %c33_306 = arith.constant 33 : index
    %c0_307 = arith.constant 0 : index
    %425 = vector.load %arg30[%c33_306, %c0_307] : memref<40x32xf32, #tpu.memory_space<vmem>>, vector<1x8xf32>
    tpu.vector_store %arg30[%c33_306, %c0_307], %423 {strides = array<i32>} : memref<40x32xf32, #tpu.memory_space<vmem>>, vector<1x8xf32>,
    %c1_308 = arith.constant 1 : index
    %c0_309 = arith.constant 0 : index
    %426 = vector.load %arg30[%c1_308, %c0_309] : memref<40x32xf32, #tpu.memory_space<vmem>>, vector<32x8xf32>
    tpu.vector_store %arg30[%c1_308, %c0_309], %43 {strides = array<i32>} : memref<40x32xf32, #tpu.memory_space<vmem>>, vector<32x8xf32>,
    %c0_310 = arith.constant 0 : index
    %c0_311 = arith.constant 0 : index
    %427 = vector.load %arg30[%c0_310, %c0_311] : memref<40x32xf32, #tpu.memory_space<vmem>>, vector<32x8xf32>
    %c2_312 = arith.constant 2 : index
    %c0_313 = arith.constant 0 : index
    %428 = vector.load %arg30[%c2_312, %c0_313] : memref<40x32xf32, #tpu.memory_space<vmem>>, vector<32x8xf32>
    %429 = vector.broadcast %14 : vector<32x1xf32> to vector<32x8xf32>
    %430 = arith.mulf %427, %429 : vector<32x8xf32>
    %c0_314 = arith.constant 0 : index
    %c0_315 = arith.constant 0 : index
    %c0_316 = arith.constant 0 : index
    %431 = vector.load %arg25[%c0_314, %c0_315, %c0_316] : memref<3x8x4xf32, #tpu.memory_space<vmem>>, vector<1x8x4xf32>
    %432 = vector.shape_cast %431 : vector<1x8x4xf32> to vector<8x4xf32>
    %cst_317 = arith.constant dense<0.000000e+00> : vector<32x4xf32>
    %433 = tpu.matmul %430, %432, %cst_317 {dimension_numbers = #tpu.dot_dimension_numbers<[1], [0], [0], [1], [0, 0, 1, 1], [], []>} : vector<32x8xf32>, vector<8x4xf32>, vector<32x4xf32> -> vector<32x4xf32>
    %c1_318 = arith.constant 1 : index
    %c0_319 = arith.constant 0 : index
    %c0_320 = arith.constant 0 : index
    %434 = vector.load %arg25[%c1_318, %c0_319, %c0_320] : memref<3x8x4xf32, #tpu.memory_space<vmem>>, vector<1x8x4xf32>
    %435 = vector.shape_cast %434 : vector<1x8x4xf32> to vector<8x4xf32>
    %cst_321 = arith.constant dense<0.000000e+00> : vector<32x4xf32>
    %436 = tpu.matmul %43, %435, %cst_321 {dimension_numbers = #tpu.dot_dimension_numbers<[1], [0], [0], [1], [0, 0, 1, 1], [], []>} : vector<32x8xf32>, vector<8x4xf32>, vector<32x4xf32> -> vector<32x4xf32>
    %437 = arith.addf %433, %436 : vector<32x4xf32>
    %438 = vector.broadcast %17 : vector<32x1xf32> to vector<32x8xf32>
    %439 = arith.mulf %428, %438 : vector<32x8xf32>
    %c2_322 = arith.constant 2 : index
    %c0_323 = arith.constant 0 : index
    %c0_324 = arith.constant 0 : index
    %440 = vector.load %arg25[%c2_322, %c0_323, %c0_324] : memref<3x8x4xf32, #tpu.memory_space<vmem>>, vector<1x8x4xf32>
    %441 = vector.shape_cast %440 : vector<1x8x4xf32> to vector<8x4xf32>
    %cst_325 = arith.constant dense<0.000000e+00> : vector<32x4xf32>
    %442 = tpu.matmul %439, %441, %cst_325 {dimension_numbers = #tpu.dot_dimension_numbers<[1], [0], [0], [1], [0, 0, 1, 1], [], []>} : vector<32x8xf32>, vector<8x4xf32>, vector<32x4xf32> -> vector<32x4xf32>
    %443 = arith.addf %437, %442 : vector<32x4xf32>
    %444 = arith.addf %422, %443 : vector<32x4xf32>
    %c0_326 = arith.constant 0 : index
    %c0_327 = arith.constant 0 : index
    %445 = vector.load %arg26[%c0_326, %c0_327] : memref<1x4xf32, #tpu.memory_space<vmem>>, vector<1x4xf32>
    %446 = vector.broadcast %445 : vector<1x4xf32> to vector<32x4xf32>
    %447 = arith.addf %444, %446 : vector<32x4xf32>
    %cst_328 = arith.constant 0.000000e+00 : f32
    %448 = vector.broadcast %cst_328 : f32 to vector<32x4xf32>
    %449 = arith.maximumf %447, %448 : vector<32x4xf32>
    %cst_329 = arith.constant dense<0.000000e+00> : vector<4xf32>
    %450 = vector.multi_reduction <add>, %449, %cst_329 [0] : vector<32x4xf32> to vector<4xf32>
    %451 = vector.shape_cast %450 : vector<4xf32> to vector<1x4xf32>
    %cst_330 = arith.constant 3.125000e-02 : f32
    %452 = vector.broadcast %cst_330 : f32 to vector<1x4xf32>
    %453 = arith.mulf %451, %452 : vector<1x4xf32>
    %454 = arith.mulf %449, %449 : vector<32x4xf32>
    %cst_331 = arith.constant dense<0.000000e+00> : vector<4xf32>
    %455 = vector.multi_reduction <add>, %454, %cst_331 [0] : vector<32x4xf32> to vector<4xf32>
    %456 = vector.shape_cast %455 : vector<4xf32> to vector<1x4xf32>
    %cst_332 = arith.constant 3.125000e-02 : f32
    %457 = vector.broadcast %cst_332 : f32 to vector<1x4xf32>
    %458 = arith.mulf %456, %457 : vector<1x4xf32>
    %459 = arith.mulf %453, %453 : vector<1x4xf32>
    %460 = arith.subf %458, %459 : vector<1x4xf32>
    %cst_333 = arith.constant 0.000000e+00 : f32
    %461 = vector.broadcast %cst_333 : f32 to vector<1x4xf32>
    %462 = arith.maximumf %460, %461 : vector<1x4xf32>
    %c0_334 = arith.constant 0 : index
    %c0_335 = arith.constant 0 : index
    %463 = vector.load %arg27[%c0_334, %c0_335] : memref<1x4xf32, #tpu.memory_space<vmem>>, vector<1x4xf32>
    %cst_336 = arith.constant 9.99999974E-6 : f32
    %464 = vector.broadcast %cst_336 : f32 to vector<1x4xf32>
    %465 = arith.addf %462, %464 : vector<1x4xf32>
    %466 = math.rsqrt %465 : vector<1x4xf32>
    %467 = arith.mulf %463, %466 : vector<1x4xf32>
    %c0_337 = arith.constant 0 : index
    %c0_338 = arith.constant 0 : index
    %468 = vector.load %arg28[%c0_337, %c0_338] : memref<1x4xf32, #tpu.memory_space<vmem>>, vector<1x4xf32>
    %469 = arith.mulf %453, %467 : vector<1x4xf32>
    %470 = arith.subf %468, %469 : vector<1x4xf32>
    %471 = vector.broadcast %467 : vector<1x4xf32> to vector<32x4xf32>
    %472 = arith.mulf %449, %471 : vector<32x4xf32>
    %473 = vector.broadcast %470 : vector<1x4xf32> to vector<32x4xf32>
    %474 = arith.addf %472, %473 : vector<32x4xf32>
    %c0_339 = arith.constant 0 : index
    %c0_340 = arith.constant 0 : index
    %475 = vector.load %arg29[%c0_339, %c0_340] : memref<32x4xf32, #tpu.memory_space<vmem>>, vector<32x4xf32>
    tpu.vector_store %arg29[%c0_339, %c0_340], %474 {strides = array<i32>} : memref<32x4xf32, #tpu.memory_space<vmem>>, vector<32x4xf32>,
    return
  }
}

</mosaic_0001>

<bundles_post_ra>
// kernel: tpu_custom_call.1
= control target key start
LH: loop header
LB: loop body
LE: loop exit
PB: predicated region body
PF: predicated region fallthrough
CT: control target
= control target key end

     0   :  { %v126_v0 = vlaneseq  ;;  %s3703_s3 = smov 1   ;;  %vm163_vm0 = vcmask 24576   ;;  %v3704_v2 = vmov 0.0   ;;  %vm198_vm1 = vcmask 1043456   ;;  %s3706_s10 = smov 5   ;;  %s4238_s0 = inlined_call_operand.smem [shape: u32[30], index: -1, kind: input, shape index: {}] }
   0x1   :  { %s3184_s6 = sld [smem:[%s4238_s0 + %s3703_s3]]   ;;  %164 = vst.msk [vmem:[#allocation2] sm:$0x1] %vm163_vm0, %v3704_v2  ;;  %165 = vst.msk [vmem:[#allocation2 + $0x21] sm:$0x1] %vm163_vm0, %v3704_v2  ;;  %vm166_vm2 = vcmask 31744   ;;  %v3705_v13 = vmov 1.0  }
   0x2   :  { %s1_s9 = sld [smem:[%s4238_s0]]   ;;  %v3752_v1 = vshrl.u32 %v126_v0, 7  ;;  %vm586_vm7 = vcmask 57344   ;;  %s3707_s14 = smov 2   ;;  %vm512_vm8 = vcmask 64512   ;;  %vm913_vm11 = vcmask 122880  }
   0x3   :  { %s3188_s13 = sld [smem:[%s4238_s0 + %s3706_s10]]   ;;  %s3708_s18 = smov 3   ;;  %vm3711_vm12 = vmmov 0   ;;  %vm860_vm13 = vcmask 130048  }
   0x4   :  { %v3757_v3 = vadd.s32 8, %v3752_v1  ;;  %v129_v10 = vadd.s32 16, %v3752_v1  ;;  %v130_v12 = vadd.s32 24, %v3752_v1  ;;  %vm131_vm3 = vcmp.eq.s32.totalorder %v3752_v1, 0  ;;  %s3185_s17 = sld [smem:[%s4238_s0 + %s3707_s14]]   ;;  %s3709_s22 = smov 4  }
   0x5   :  { %v3780_v14 = vsel %vm131_vm3, 0.0, %v3705_v13  ;;  %s3186_s21 = sld [smem:[%s4238_s0 + %s3708_s18]]   ;;  %vm574_vm9 = vcmp.eq.s32.totalorder %v3752_v1, 7  ;;  %s3710_s26 = smov 9   ;;  %vm907_vm14 = vcmp.eq.s32.totalorder %v3752_v1, 3  ;;  %vm908_vm15 = vcmp.eq.s32.totalorder %v3752_v1, 4 }
   0x6   :  { %vm136_vm4 = vcmp.eq.s32.totalorder %v3757_v3, 15  ;;  %vm141_vm5 = vcmp.eq.s32.totalorder %v129_v10, 16  ;;  %vm150_vm6 = vcmp.eq.s32.totalorder %v130_v12, 31  ;;  %s3187_s25 = sld [smem:[%s4238_s0 + %s3709_s22]]   ;;  %vm577_vm10 = vcmp.eq.s32.totalorder %v3757_v3, 8  ;;  %s3712_s30 = smov 6   ;;  %vm910_vm0 = vmor %vm907_vm14, %vm574_vm9 }
   0x7   :  { %v3213_v4 = vld [vmem:[%s3184_s6 + $0x4] sm:$0xf]  ;;  %v3224_v5 = vld [vmem:[%s3184_s6 + $0x8] sm:$0xf]  ;;  %v183_v6 = vld [vmem:[%s3184_s6] sm:$0xf]  ;;  %s3877_s29 = sld [smem:[%s4238_s0 + %s3710_s26]]  }
   0x8   :  { %3435 = vmatprep.subr.msk.mxu0 %vm198_vm1, %v3213_v4  ;;  %v122_v7 = vld [vmem:[%s1_s9] sm:$0xff]  ;;  %v123_v8 = vld [vmem:[%s1_s9 + $0x8] sm:$0xff]  ;;  %v124_v9 = vld [vmem:[%s1_s9 + $0x10] sm:$0xff]  ;;  %3443 = vmatprep.subr.msk.mxu1 %vm198_vm1, %v183_v6  ;;  %v3783_v15 = vsel %vm136_vm4, 0.0, %v3705_v13  ;;  %v3786_v16 = vsel %vm141_vm5, 0.0, %v3705_v13  ;;  %v3789_v20 = vsel %vm150_vm6, 0.0, %v3705_v13  ;;  %s3189_s3 = sld [smem:[%s4238_s0 + %s3712_s30]]  }
   0x9   :  { %3436 = vmatpush3.msk.msra.mxu0 %vm198_vm1, %v3213_v4  ;;  %167 = vst.msk [vmem:[#allocation2 + $0x1] sm:$0xff] %vm166_vm2, %v122_v7  ;;  %3437 = vmatprep.mubr.msk.f32.mxu0 %vm166_vm2, %v122_v7  ;;  %168 = vst.msk [vmem:[#allocation2 + $0x9] sm:$0xff] %vm166_vm2, %v123_v8  ;;  %v125_v11 = vld [vmem:[%s1_s9 + $0x18] sm:$0xff]  ;;  %v3231_v30 = vld [vmem:[%s3188_s13 + $0x8] sm:$0xff]  ;;  %s3713_s4 = smov 7   ;;  %s3714_s8 = smov 8  }
   0xa   :  { %169 = vst.msk [vmem:[#allocation2 + $0x11] sm:$0xff] %vm166_vm2, %v124_v9  ;;  %3438 = vmatmul.mubr.msk.f32.vlgmr.msra.gmra.mxu0 %vm166_vm2, %v123_v8  ;;  %3451 = vmatprep.subr.msk.mxu0 %vm198_vm1, %v3224_v5  ;;  %170 = vst.msk [vmem:[#allocation2 + $0x19] sm:$0xff] %vm166_vm2, %v125_v11  ;;  %v3236_v31 = vld [vmem:[%s3188_s13 + $0x10] sm:$0xff]  ;;  %v3808_v32 = vld [vmem:[%s3188_s13] sm:$0xff]  ;;  %s3190_s7 = sld [smem:[%s4238_s0 + %s3713_s4]]   ;;  %vm1200_vm4 = vcmask 253952   ;;  %s3715_s12 = smov 13  }
   0xb   :  { %3452 = vmatpush3.msk.msra.mxu0 %vm198_vm1, %v3224_v5  ;;  %3440 = vmatprep.mubr.msk.f32.mxu0 %vm166_vm2, %v124_v9  ;;  %v3230_v41 = vld [vmem:[%s3185_s17] ss:$0 sm:$0xff]  ;;  %s3191_s11 = sld [smem:[%s4238_s0 + %s3714_s8]]   ;;  %s3718_s16 = smov 15  }
   0xc   :  { %3444 = vmatpush3.msk.msra.mxu1 %vm198_vm1, %v183_v6  ;;  %3469 = vmatprep.subr.mxu0 %v3236_v31  ;;  %vm909_vm1 = vmor %vm131_vm3, %vm908_vm15  ;;  %s3951_s15 = sld [smem:[%s4238_s0 + %s3715_s12]]   ;;  %s3723_s20 = smov 10   ;;  %vm1158_vm3 = vcmask 261120  }
   0xd   :  { %3459 = vmatprep.subr.mxu1 %v3231_v30  ;;  %s3198_s19 = sld [smem:[%s4238_s0 + %s3718_s16]]   ;;  %s3724_s24 = smov 11  }
   0xe   :  { %3441 = vmatmul.mubr.msk.f32.gmra.mxu0 %vm166_vm2, %v125_v11  ;;  %s3193_s23 = sld [smem:[%s4238_s0 + %s3723_s20]]   ;;  %s3725_s28 = smov 12  }
   0xf   :  { %s3194_s27 = sld [smem:[%s4238_s0 + %s3724_s24]]   ;;  %s3726_s2 = smov 16  }
  0x10   :  { %v175_v17 = vld [vmem:[#allocation2 + $0x2] sm:$0xff]  ;;  %s3195_s1 = sld [smem:[%s4238_s0 + %s3725_s28]]   ;;  %s3727_s6 = smov 17  }
  0x11   :  { %v176_v18 = vld [vmem:[#allocation2 + $0xa] sm:$0xff]  ;;  %v171_v19 = vld [vmem:[#allocation2] sm:$0xff]  ;;  %3453 = vmatprep.mubr.msk.f32.mxu0 %vm166_vm2, %v175_v17  ;;  %v177_v25 = vld [vmem:[#allocation2 + $0x12] sm:$0xff]  ;;  %s4012_s5 = sld [smem:[%s4238_s0 + %s3726_s2]]   ;;  %s3728_s10 = smov 14  }
  0x12   :  { %v179_v21 = vmul.f32 %v171_v19, %v3780_v14  ;;  %v172_v22 = vld [vmem:[#allocation2 + $0x8] sm:$0xff]  ;;  %v388_v23 = vmul.f32 %v176_v18, %v3783_v15  ;;  %v173_v24 = vld [vmem:[#allocation2 + $0x10] sm:$0xff]  ;;  %v178_v27 = vld [vmem:[#allocation2 + $0x1a] sm:$0xff]  ;;  %s4022_s9 = sld [smem:[%s4238_s0 + %s3727_s6]]   ;;  %s3729_s14 = smov 21  }
  0x13   :  { %v181_v26 = vmul.f32 %v173_v24, %v3786_v16  ;;  %v390_v28 = vmul.f32 %v178_v27, %v3789_v20  ;;  %v174_v29 = vld [vmem:[#allocation2 + $0x18] sm:$0xff]  ;;  %2452 = vst.msk [vmem:[#allocation2 + $0x21] sm:$0x1] %vm586_vm7, %v3704_v2  ;;  %s3197_s13 = sld [smem:[%s4238_s0 + %s3728_s10]]   ;;  %s3730_s18 = smov 23  }
  0x14   :  { %3445 = vmatprep.mubr.msk.f32.mxu1 %vm166_vm2, %v179_v21  ;;  %3454 = vmatmul.mubr.msk.f32.vlgmr.msra.gmra.mxu0 %vm166_vm2, %v388_v23  ;;  %s4080_s17 = sld [smem:[%s4238_s0 + %s3729_s14]]   ;;  %s3731_s22 = smov 18  }
  0x15   :  { %3446 = vmatmul.mubr.msk.f32.vlgmr.msra.gmra.mxu1 %vm166_vm2, %v172_v22  ;;  %3456 = vmatprep.mubr.msk.f32.mxu0 %vm166_vm2, %v177_v25  ;;  %s3732_s26 = smov 19   ;;  %s3733_s30 = smov 20  }
  0x16   :  { %3448 = vmatprep.mubr.msk.f32.mxu1 %vm166_vm2, %v181_v26  ;;  %3460 = vmatpush3.msra.mxu1 %v3231_v30  ;;  %s3734_s4 = smov 24   ;;  %s3735_s8 = smov 25  }
  0x17   :  { %3464 = vmatprep.subr.mxu1 %v3808_v32  ;;  %3470 = vmatpush3.msra.mxu0 %v3236_v31  ;;  %s3736_s12 = smov 22   ;;  %s3737_s16 = smov 26  }
  0x18   :  { %3457 = vmatmul.mubr.msk.f32.gmra.mxu0 %vm166_vm2, %v390_v28  ;;  %3481 = vmatprep.subr.mxu0 %v3704_v2  ;;  %s3738_s20 = smov 27   ;;  %s3739_s24 = smov 28  }
  0x19   :  { %3449 = vmatmul.mubr.msk.f32.gmra.mxu1 %vm166_vm2, %v174_v29  ;;  %s3740_s28 = smov 29  }
  0xca   :  { %v3439_v33 = vpop.f32.mrf.mxu0 }
  0xcc   :  { %v268_v34 = vpop.f32.mrf.mxu0 }
  0xce   :  { %v3442_v35 = vpop.f32.mrf.mxu0 }
  0xd0   :  { %v278_v36 = vpop.f32.mrf.mxu0 }
  0xd4   :  { %v3455_v37 = vpop.f32.mrf.mxu0 }
  0xd5   :  { %v3447_v38 = vpop.f32.mrf.mxu1 }
  0xd6   :  { %v374_v39 = vadd.f32 %v3447_v38, %v3439_v33  ;;  %v474_v40 = vpop.f32.mrf.mxu0 }
  0xd7   :  { %v368_v42 = vpop.f32.mrf.mxu1 }
  0xd8   :  { %v494_v43 = vadd.f32 %v3455_v37, %v374_v39  ;;  %v369_v44 = vadd.f32 %v368_v42, %v268_v34  ;;  %v3458_v46 = vpop.f32.mrf.mxu0  ;;  %v551_v39 = vld [vmem:[%s3186_s21] sm:$0x1]  ;;  %s3206_s21 = sld [smem:[%s4238_s0 + %s3730_s18]]  }
  0xd9   :  { %v3450_v45 = vpop.f32.mrf.mxu1 }
  0xda   :  { %v505_v47 = vadd.f32 %v3230_v41, %v494_v43  ;;  %v493_v48 = vadd.f32 %v474_v40, %v369_v44  ;;  %v384_v49 = vadd.f32 %v3450_v45, %v3442_v35  ;;  %v484_v55 = vpop.f32.mrf.mxu0  ;;  %v3846_v40 = vsub.s32 0, %v3752_v1  ;;  %v555_v43 = vld [vmem:[%s3187_s25] sm:$0x1]  ;;  %s3201_s25 = sld [smem:[%s4238_s0 + %s3731_s22]]  }
  0xdb   :  { %v378_v50 = vpop.f32.mrf.mxu1 }
  0xdc   :  { %v3815_v51 = vmax.f32 %v505_v47, 0.0  ;;  %v504_v52 = vadd.f32 %v3230_v41, %v493_v48  ;;  %v496_v53 = vadd.f32 %v3458_v46, %v384_v49  ;;  %v379_v54 = vadd.f32 %v378_v50, %v278_v36 }
  0xde   :  { %514 = vst.msk [vmem:[#allocation2 + $0x8] sm:$0xff] %vm512_vm8, %v3815_v51  ;;  %v3819_v56 = vmax.f32 %v504_v52, 0.0  ;;  %v507_v57 = vadd.f32 %v3230_v41, %v496_v53  ;;  %v495_v58 = vadd.f32 %v484_v55, %v379_v54  ;;  %v3861_v53 = vsel %vm574_vm9, 0.0, %v3705_v13 }
  0xdf   :  { %v3864_v54 = vsel %vm577_vm10, 0.0, %v3705_v13 }
  0xe0   :  { %513 = vst.msk [vmem:[#allocation2] sm:$0xff] %vm512_vm8, %v3819_v56  ;;  %v3823_v59 = vmax.f32 %v507_v57, 0.0  ;;  %v506_v60 = vadd.f32 %v3230_v41, %v495_v58 }
  0xe2   :  { %516 = vst.msk [vmem:[#allocation2 + $0x18] sm:$0xff] %vm512_vm8, %v3823_v59  ;;  %v3827_v61 = vmax.f32 %v506_v60, 0.0 }
  0xe4   :  { %515 = vst.msk [vmem:[#allocation2 + $0x10] sm:$0xff] %vm512_vm8, %v3827_v61 }
  0xe7   :  { %v517_v62 = vld [vmem:[#allocation2] ss:$2 sm:$0xff]  ;;  %v521_v63 = vld [vmem:[#allocation2 + $0x1] ss:$2 sm:$0xff] }
  0xe8   :  { %587 = vst.msk [vmem:[#allocation2] sm:$0x1] %vm586_vm7, %v3704_v2  ;;  %v524_v0 = vmax.f32 %v517_v62, %v521_v63 }
  0xea   :  { %v536_v7 = vmul.f32 %v524_v0, %v524_v0  ;;  %v526_v8 = vsel %vm512_vm8, %v524_v0, 0.0 }
  0xeb   :  { %v519_v4 = vld [vmem:[#allocation2 + $0x10] ss:$2 sm:$0xff]  ;;  %v523_v5 = vld [vmem:[#allocation2 + $0x11] ss:$2 sm:$0xff] }
  0xec   :  { %588 = vst.msk [vmem:[#allocation2 + $0x11] sm:$0x1] %vm586_vm7, %v3704_v2  ;;  %v525_v6 = vmax.f32 %v519_v4, %v523_v5  ;;  %v538_v12 = vsel %vm512_vm8, %v536_v7, 0.0  ;;  %v3240_v4 = vld [vmem:[%s3877_s29 + $0x10] sm:$0xff]  ;;  %v921_v5 = vld [vmem:[%s3877_s29 + $0x8] sm:$0xff] }
  0xee   :  { %v527_v9 = vsel %vm512_vm8, %v525_v6, 0.0  ;;  %v537_v10 = vmul.f32 %v525_v6, %v525_v6 }
  0xef   :  { %v528_v11 = vadd.f32 %v527_v9, %v526_v8 }
  0xf0   :  { %v539_v17 = vsel %vm512_vm8, %v537_v10, 0.0 }
  0xf1   :  { %v529_v18 = vrot.slane %v528_v11, 4  ;;  %v540_v19 = vadd.f32 %v539_v17, %v538_v12  ;;  %v3239_v12 = vld [vmem:[%s3189_s3] ss:$0 sm:$0xff]  ;;  %s3203_s3 = sld [smem:[%s4238_s0 + %s3733_s30]]  }
  0xf3   :  { %v530_v21 = vadd.f32 %v529_v18, %v528_v11  ;;  %v541_v22 = vrot.slane %v540_v19, 4 }
  0xf5   :  { %v531_v23 = vrot.slane %v530_v21, 2  ;;  %v542_v24 = vadd.f32 %v541_v22, %v540_v19 }
  0xf7   :  { %v532_v25 = vadd.f32 %v531_v23, %v530_v21  ;;  %v543_v26 = vrot.slane %v542_v24, 2 }
  0xf9   :  { %v533_v27 = vrot.slane %v532_v25, 1  ;;  %v544_v28 = vadd.f32 %v543_v26, %v542_v24 }
  0xfb   :  { %v534_v29 = vadd.f32 %v533_v27, %v532_v25  ;;  %v545_v30 = vrot.slane %v544_v28, 1 }
  0xfd   :  { %v535_v31 = vmul.f32 0.0625, %v534_v29  ;;  %v546_v33 = vadd.f32 %v545_v30, %v544_v28 }
  0xff   :  { %v547_v34 = vmul.f32 0.0625, %v546_v33  ;;  %v548_v35 = vmul.f32 %v535_v31, %v535_v31 }
 0x101   :  { %v549_v36 = vsub.f32 %v547_v34, %v548_v35 }
 0x103   :  { %v550_v37 = vmax.f32 %v549_v36, 0.0 }
 0x105   :  { %v552_v38 = vadd.f32 1e-05, %v550_v37 }
 0x107   :  { %3693 = vrsqrt.f32 %v552_v38 }
 0x114   :  { %v3694_v41 = vpop.eup %3693 }
 0x115   :  { %v554_v42 = vmul.f32 %v3694_v41, %v551_v39 }
 0x117   :  { %v556_v44 = vmul.f32 %v554_v42, %v535_v31  ;;  %v562_v45 = vrot.slane %v554_v42, %v3846_v40 }
 0x119   :  { %v557_v46 = vsub.f32 %v555_v43, %v556_v44  ;;  %v564_v47 = vmul.f32 %v562_v45, %v524_v0  ;;  %v565_v48 = vmul.f32 %v562_v45, %v525_v6  ;;  %v3241_v0 = vld [vmem:[%s3877_s29 + $0x18] sm:$0xff]  ;;  %v920_v6 = vld [vmem:[%s3877_s29] sm:$0xff] }
 0x11b   :  { %v570_v49 = vrot.slane %v557_v46, %v3846_v40 }
 0x11d   :  { %v572_v50 = vadd.f32 %v570_v49, %v564_v47  ;;  %v573_v52 = vadd.f32 %v570_v49, %v565_v48 }
 0x11f   :  { %589 = vst.msk [vmem:[#allocation2 + $0x1] sm:$0xff] %vm512_vm8, %v572_v50  ;;  %590 = vst.msk [vmem:[#allocation2 + $0x9] sm:$0xff] %vm512_vm8, %v573_v52  ;;  %3461 = vmatprep.mubr.msk.f32.mxu1 %vm512_vm8, %v572_v50 }
 0x120   :  { %3462 = vmatmul.mubr.msk.f32.vlgmr.msra.gmra.mxu1 %vm512_vm8, %v573_v52 }
 0x121   :  { %3465 = vmatpush3.msra.mxu1 %v3808_v32 }
 0x122   :  { %3474 = vmatprep.subr.mxu1 %v3704_v2 }
 0x126   :  { %v593_v55 = vld [vmem:[#allocation2 + $0x2] sm:$0xff]  ;;  %v594_v57 = vld [vmem:[#allocation2 + $0xa] sm:$0xff] }
 0x127   :  { %v591_v58 = vld [vmem:[#allocation2] sm:$0xff]  ;;  %v762_v32 = vmul.f32 %v593_v55, %v3861_v53  ;;  %v592_v62 = vld [vmem:[#allocation2 + $0x8] sm:$0xff]  ;;  %v763_v3 = vmul.f32 %v594_v57, %v3783_v15  ;;  %1497 = vst.msk [vmem:[#allocation2 + $0x11] sm:$0x1] %vm913_vm11, %v3704_v2 }
 0x128   :  { %v595_v60 = vmul.f32 %v591_v58, %v3780_v14  ;;  %v596_v63 = vmul.f32 %v592_v62, %v3864_v54  ;;  %v886_v57 = vld [vmem:[%s3190_s7] sm:$0x1]  ;;  %s3207_s7 = sld [smem:[%s4238_s0 + %s3734_s4]]  }
 0x129   :  { %3471 = vmatprep.mubr.msk.f32.mxu0 %vm512_vm8, %v762_v32  ;;  %v890_v32 = vld [vmem:[%s3191_s11] sm:$0x1]  ;;  %s4143_s11 = sld [smem:[%s4238_s0 + %s3735_s8]]  }
 0x12a   :  { %3466 = vmatprep.mubr.msk.f32.mxu1 %vm512_vm8, %v595_v60  ;;  %3472 = vmatmul.mubr.msk.f32.vlgmr.msra.gmra.mxu0 %vm512_vm8, %v763_v3 }
 0x12b   :  { %3467 = vmatmul.mubr.msk.f32.vlgmr.msra.gmra.mxu1 %vm512_vm8, %v596_v63  ;;  %3485 = vmatprep.mubr.msk.f32.mxu0 %vm3711_vm12, %v3704_v2 }
 0x12c   :  { %3475 = vmatpush3.msra.mxu1 %v3241_v0  ;;  %3478 = vmatprep.mubr.msk.f32.mxu1 %vm3711_vm12, %v3704_v2 }
 0x12d   :  { %3476 = vmatprep.subr.mxu1 %v3704_v2  ;;  %3482 = vmatpush3.msra.mxu0 %v921_v5 }
 0x12e   :  { %3477 = vmatpush3.msra.mxu1 %v3240_v4  ;;  %3483 = vmatprep.subr.mxu0 %v3704_v2 }
 0x12f   :  { %3488 = vmatprep.subr.mxu1 %v3704_v2  ;;  %3484 = vmatpush3.msra.mxu0 %v920_v6  ;;  %v3245_v6 = vld [vmem:[%s3877_s29 + $0x28] sm:$0xff] }
 0x130   :  { %3495 = vmatprep.subr.mxu0 %v3704_v2 }
 0x1e0   :  { %v3463_v7 = vpop.f32.mrf.mxu1 }
 0x1e2   :  { %v672_v8 = vpop.f32.mrf.mxu1 }
 0x1ea   :  { %v3473_v10 = vpop.f32.mrf.mxu0 }
 0x1eb   :  { %v3468_v9 = vpop.f32.mrf.mxu1 }
 0x1ec   :  { %v759_v11 = vadd.f32 %v3468_v9, %v3463_v7  ;;  %v838_v21 = vpop.f32.mrf.mxu0  ;;  %v3244_v7 = vld [vmem:[%s3877_s29 + $0x20] sm:$0xff]  ;;  %v3936_v9 = vsel %vm910_vm0, 0.0, %v3705_v13  ;;  %s3202_s29 = sld [smem:[%s4238_s0 + %s3732_s26]]  }
 0x1ed   :  { %v753_v17 = vpop.f32.mrf.mxu1 }
 0x1ee   :  { %v848_v18 = vadd.f32 %v3473_v10, %v759_v11  ;;  %v754_v19 = vadd.f32 %v753_v17, %v672_v8  ;;  %v3933_v8 = vsel %vm909_vm1, 0.0, %v3705_v13  ;;  %v3251_v13 = vld [vmem:[%s3951_s15 + $0x38] sm:$0xff]  ;;  %v3250_v17 = vld [vmem:[%s3951_s15 + $0x30] sm:$0xff] }
 0x1f0   :  { %v857_v22 = vadd.f32 %v3239_v12, %v848_v18  ;;  %v847_v23 = vadd.f32 %v838_v21, %v754_v19  ;;  %v3249_v18 = vld [vmem:[%s3951_s15 + $0x28] sm:$0xff]  ;;  %v3248_v19 = vld [vmem:[%s3951_s15 + $0x20] sm:$0xff]  ;;  %v1210_v21 = vld [vmem:[%s3951_s15 + $0x18] sm:$0xff] }
 0x1f2   :  { %v3896_v24 = vmax.f32 %v857_v22, 0.0  ;;  %v856_v25 = vadd.f32 %v3239_v12, %v847_v23  ;;  %v1209_v22 = vld [vmem:[%s3951_s15 + $0x10] sm:$0xff]  ;;  %v1208_v23 = vld [vmem:[%s3951_s15 + $0x8] sm:$0xff] }
 0x1f4   :  { %862 = vst.msk [vmem:[#allocation2 + $0x8] sm:$0xff] %vm860_vm13, %v3896_v24  ;;  %v3900_v26 = vmax.f32 %v856_v25, 0.0  ;;  %v1207_v25 = vld [vmem:[%s3951_s15] sm:$0xff] }
 0x1f6   :  { %861 = vst.msk [vmem:[#allocation2] sm:$0xff] %vm860_vm13, %v3900_v26 }
 0x1fd   :  { %v863_v27 = vld [vmem:[#allocation2] ss:$2 sm:$0xff]  ;;  %v864_v28 = vld [vmem:[#allocation2 + $0x1] ss:$2 sm:$0xff] }
 0x1fe   :  { %v865_v29 = vmax.f32 %v863_v27, %v864_v28  ;;  %914 = vst.msk [vmem:[#allocation2] sm:$0x1] %vm913_vm11, %v3704_v2  ;;  %915 = vst.msk [vmem:[#allocation2 + $0x9] sm:$0x1] %vm913_vm11, %v3704_v2  ;;  %v3716_v27 = vmov 3   ;;  %v3717_v28 = vmov 0  }
 0x1ff   :  { %3679 = vset.pattern.permute.xlu1 %v3716_v27  ;;  %3677 = vset.pattern.permute.xlu0 %v3717_v28 }
 0x200   :  { %v866_v30 = vsel %vm860_vm13, %v865_v29, 0.0  ;;  %v874_v31 = vmul.f32 %v865_v29, %v865_v29 }
 0x201   :  { %v867_v33 = vrot.slane %v866_v30, 4 }
 0x202   :  { %v875_v34 = vsel %vm860_vm13, %v874_v31, 0.0  ;;  %v3720_v31 = vmov 1  }
 0x203   :  { %v868_v35 = vadd.f32 %v867_v33, %v866_v30  ;;  %v876_v36 = vrot.slane %v875_v34, 4  ;;  %v3719_v30 = vmov 4   ;;  %v3721_v33 = vmov 2  }
 0x205   :  { %v869_v37 = vrot.slane %v868_v35, 2  ;;  %v877_v38 = vadd.f32 %v876_v36, %v875_v34  ;;  %v3722_v34 = vmov 5  }
 0x207   :  { %v870_v39 = vadd.f32 %v869_v37, %v868_v35  ;;  %v878_v41 = vrot.slane %v877_v38, 2 }
 0x209   :  { %v871_v42 = vrot.slane %v870_v39, 1  ;;  %v879_v43 = vadd.f32 %v878_v41, %v877_v38  ;;  %v3247_v41 = vld [vmem:[%s3193_s23] ss:$0 sm:$0xff]  ;;  %s3210_s23 = sld [smem:[%s4238_s0 + %s3738_s20]]  }
 0x20b   :  { %v872_v44 = vadd.f32 %v871_v42, %v870_v39  ;;  %v880_v45 = vrot.slane %v879_v43, 1 }
 0x20d   :  { %v873_v46 = vmul.f32 0.125, %v872_v44  ;;  %v881_v47 = vadd.f32 %v880_v45, %v879_v43 }
 0x20f   :  { %v882_v48 = vmul.f32 0.125, %v881_v47  ;;  %v883_v49 = vmul.f32 %v873_v46, %v873_v46 }
 0x211   :  { %v884_v50 = vsub.f32 %v882_v48, %v883_v49 }
 0x213   :  { %v885_v52 = vmax.f32 %v884_v50, 0.0 }
 0x215   :  { %v887_v55 = vadd.f32 1e-05, %v885_v52 }
 0x217   :  { %3695 = vrsqrt.f32 %v887_v55 }
 0x224   :  { %v3696_v58 = vpop.eup %3695 }
 0x225   :  { %v889_v60 = vmul.f32 %v3696_v58, %v886_v57 }
 0x227   :  { %v891_v62 = vmul.f32 %v889_v60, %v873_v46  ;;  %v897_v3 = vrot.slane %v889_v60, %v3846_v40 }
 0x229   :  { %v892_v63 = vsub.f32 %v890_v32, %v891_v62  ;;  %v899_v0 = vmul.f32 %v897_v3, %v865_v29  ;;  %v1456_v29 = vld [vmem:[%s3198_s19] sm:$0xff]  ;;  %s3209_s19 = sld [smem:[%s4238_s0 + %s3737_s16]]  }
 0x22a   :  { %1476 = vperm.xlu1 %3679, %v1456_v29   ;;  %1459 = vperm.xlu0 %3677, %v1456_v29  }
 0x22b   :  { %v904_v4 = vrot.slane %v892_v63, %v3846_v40 }
 0x22d   :  { %v906_v5 = vadd.f32 %v904_v4, %v899_v0 }
 0x22e   :  { %3680 = vset.pattern.permute.xlu1 %v3719_v30  ;;  %3678 = vset.pattern.permute.xlu0 %v3720_v31 }
 0x22f   :  { %916 = vst.msk [vmem:[#allocation2 + $0x1] sm:$0xff] %vm860_vm13, %v906_v5  ;;  %3479 = vmatmul.mubr.msk.f32.vlgmr.msra.gmra.mxu1 %vm860_vm13, %v906_v5  ;;  %1481 = vperm.xlu1 %3680, %v1456_v29  }
 0x230   :  { %3489 = vmatpush3.msra.mxu1 %v3245_v6  ;;  %3492 = vmatprep.mubr.msk.f32.mxu1 %vm3711_vm12, %v3704_v2 }
 0x231   :  { %3490 = vmatprep.subr.mxu1 %v3704_v2  ;;  %1464 = vperm.xlu0 %3678, %v1456_v29  }
 0x232   :  { %3491 = vmatpush3.msra.mxu1 %v3244_v7 }
 0x233   :  { %3506 = vmatprep.subr.mxu1 %v3704_v2  ;;  %3681 = vset.pattern.permute.xlu1 %v3721_v33 }
 0x234   :  { %1470 = vperm.xlu1 %3681, %v1456_v29  }
 0x235   :  { %3682 = vset.pattern.permute.xlu0 %v3722_v34 }
 0x236   :  { %v918_v10 = vld [vmem:[#allocation2 + $0x2] sm:$0xff]  ;;  %1487 = vperm.xlu0 %3682, %v1456_v29   ;;  %v3257_v29 = vld [vmem:[%s3951_s15 + $0x58] sm:$0xff] }
 0x237   :  { %v917_v11 = vld [vmem:[#allocation2] sm:$0xff]  ;;  %1202 = vst.msk [vmem:[#allocation2 + $0x9] sm:$0x1] %vm1200_vm4, %v3704_v2  ;;  %v1071_v1 = vmul.f32 %v918_v10, %v3936_v9 }
 0x238   :  { %1201 = vst.msk [vmem:[#allocation2] sm:$0x1] %vm1200_vm4, %v3704_v2  ;;  %v919_v12 = vmul.f32 %v917_v11, %v3933_v8  ;;  %3683 = vset.pattern.permute.xlu1 %v3717_v28 }
 0x239   :  { %3493 = vmatmul.mubr.msk.f32.vlgmr.msra.gmra.mxu1 %vm860_vm13, %v1071_v1  ;;  %v1179_v1 = vld [vmem:[%s3194_s27] sm:$0x1]  ;;  %s3211_s27 = sld [smem:[%s4238_s0 + %s3739_s24]]  }
 0x23a   :  { %3486 = vmatmul.mubr.msk.f32.vlgmr.msra.gmra.mxu0 %vm860_vm13, %v919_v12  ;;  %3514 = vmatprep.mubr.msk.f32.mxu1 %vm3711_vm12, %v3704_v2 }
 0x23b   :  { %3503 = vmatprep.mubr.msk.f32.mxu0 %vm3711_vm12, %v3704_v2  ;;  %3496 = vmatpush3.msra.mxu0 %v3251_v13 }
 0x23c   :  { %3497 = vmatprep.subr.mxu0 %v3704_v2  ;;  %3507 = vmatpush3.msra.mxu1 %v1210_v21 }
 0x23d   :  { %3498 = vmatpush3.msra.mxu0 %v3250_v17  ;;  %3508 = vmatprep.subr.mxu1 %v3704_v2 }
 0x23e   :  { %3499 = vmatprep.subr.mxu0 %v3704_v2  ;;  %3509 = vmatpush3.msra.mxu1 %v1209_v22 }
 0x23f   :  { %3500 = vmatpush3.msra.mxu0 %v3249_v18  ;;  %3510 = vmatprep.subr.mxu1 %v3704_v2  ;;  %v1183_v18 = vld [vmem:[%s3195_s1] sm:$0x1]  ;;  %s3212_s1 = sld [smem:[%s4238_s0 + %s3740_s28]]  }
 0x240   :  { %3501 = vmatprep.subr.mxu0 %v3704_v2  ;;  %3511 = vmatpush3.msra.mxu1 %v1208_v23 }
 0x241   :  { %3502 = vmatpush3.msra.mxu0 %v3248_v19  ;;  %3512 = vmatprep.subr.mxu1 %v3704_v2 }
 0x242   :  { %3517 = vmatprep.subr.mxu0 %v3704_v2  ;;  %3513 = vmatpush3.msra.mxu1 %v1207_v25 }
 0x243   :  { %3685 = vset.pattern.permute.xlu0 %v3716_v27 }
 0x2ef   :  { %v994_v35 = vpop.f32.mrf.mxu1 }
 0x2f1   :  { %v3480_v36 = vpop.f32.mrf.mxu1 }
 0x2f2   :  { %v3255_v36 = vld [vmem:[%s3951_s15 + $0x48] sm:$0xff] }
 0x2f9   :  { %v1144_v38 = vpop.f32.mrf.mxu1 }
 0x2fa   :  { %v1067_v37 = vpop.f32.mrf.mxu0 }
 0x2fb   :  { %v1068_v39 = vadd.f32 %v1067_v37, %v994_v35  ;;  %v3494_v43 = vpop.f32.mrf.mxu1  ;;  %v3256_v35 = vld [vmem:[%s3951_s15 + $0x50] sm:$0xff]  ;;  %v3254_v37 = vld [vmem:[%s3951_s15 + $0x40] sm:$0xff]  ;;  %s3205_s15 = sld [smem:[%s4238_s0 + %s3736_s12]]  }
 0x2fc   :  { %v3487_v42 = vpop.f32.mrf.mxu0  ;;  %v3260_v43 = vld [vmem:[%s4012_s5 + $0x10] sm:$0xff] }
 0x2fd   :  { %v1148_v44 = vadd.f32 %v1144_v38, %v1068_v39 }
 0x2ff   :  { %v1156_v45 = vadd.f32 %v3247_v41, %v1148_v44  ;;  %v3267_v44 = vld [vmem:[%s4012_s5 + $0x28] sm:$0xff] }
 0x301   :  { %v1157_v46 = vmax.f32 %v1156_v45, 0.0  ;;  %v3266_v45 = vld [vmem:[%s4012_s5 + $0x20] sm:$0xff] }
 0x303   :  { %v1159_v47 = vsel %vm1158_vm3, %v1157_v46, 0.0  ;;  %v1167_v48 = vmul.f32 %v1157_v46, %v1157_v46 }
 0x304   :  { %v1160_v49 = vrot.slane %v1159_v47, 4 }
 0x305   :  { %v1168_v50 = vsel %vm1158_vm3, %v1167_v48, 0.0 }
 0x306   :  { %v1161_v52 = vadd.f32 %v1160_v49, %v1159_v47  ;;  %v1169_v55 = vrot.slane %v1168_v50, 4 }
 0x308   :  { %v1162_v57 = vrot.slane %v1161_v52, 2  ;;  %v1170_v58 = vadd.f32 %v1169_v55, %v1168_v50  ;;  %v3259_v55 = vld [vmem:[%s3197_s13] ss:$0 sm:$0xff] }
 0x30a   :  { %v1163_v60 = vadd.f32 %v1162_v57, %v1161_v52  ;;  %v1171_v32 = vrot.slane %v1170_v58, 2 }
 0x30c   :  { %v1164_v62 = vrot.slane %v1163_v60, 1  ;;  %v1172_v3 = vadd.f32 %v1171_v32, %v1170_v58 }
 0x30e   :  { %v1165_v63 = vadd.f32 %v1164_v62, %v1163_v60  ;;  %v1173_v0 = vrot.slane %v1172_v3, 1  ;;  %v1477_v62 = vpop.permute.xlu1 %1476 }
 0x310   :  { %v1166_v4 = vmul.f32 0.125, %v1165_v63  ;;  %v1174_v5 = vadd.f32 %v1173_v0, %v1172_v3  ;;  %v1460_v3 = vpop.permute.xlu0 %1459 }
 0x312   :  { %v1175_v6 = vmul.f32 0.125, %v1174_v5  ;;  %v1176_v7 = vmul.f32 %v1166_v4, %v1166_v4  ;;  %v1482_v0 = vpop.permute.xlu1 %1481 }
 0x314   :  { %v1177_v10 = vsub.f32 %v1175_v6, %v1176_v7 }
 0x316   :  { %v1178_v11 = vmax.f32 %v1177_v10, 0.0  ;;  %v1471_v6 = vpop.permute.xlu1 %1470 }
 0x318   :  { %v1180_v12 = vadd.f32 1e-05, %v1178_v11 }
 0x31a   :  { %3697 = vrsqrt.f32 %v1180_v12 }
 0x327   :  { %v3698_v13 = vpop.eup %3697 }
 0x328   :  { %v1182_v17 = vmul.f32 %v3698_v13, %v1179_v1 }
 0x32a   :  { %v1184_v19 = vmul.f32 %v1182_v17, %v1166_v4  ;;  %v1190_v21 = vrot.slane %v1182_v17, %v3846_v40  ;;  %v1465_v4 = vpop.permute.xlu0 %1464 }
 0x32c   :  { %v1185_v22 = vsub.f32 %v1183_v18, %v1184_v19  ;;  %v1192_v23 = vmul.f32 %v1190_v21, %v1157_v46  ;;  %v4025_v46 = vld [vmem:[%s4022_s9 + $0x8] sm:$0xff] }
 0x32e   :  { %v1197_v25 = vrot.slane %v1185_v22, %v3846_v40  ;;  %v1488_v10 = vpop.permute.xlu0 %1487 }
 0x330   :  { %v1199_v27 = vadd.f32 %v1197_v25, %v1192_v23 }
 0x332   :  { %1203 = vst.msk [vmem:[#allocation2 + $0x1] sm:$0xff] %vm1158_vm3, %v1199_v27  ;;  %3504 = vmatmul.mubr.msk.f32.vlgmr.msra.gmra.mxu0 %vm1158_vm3, %v1199_v27 }
 0x333   :  { %3518 = vmatpush3.msra.mxu0 %v3257_v29  ;;  %3525 = vmatprep.mubr.msk.f32.mxu0 %vm3711_vm12, %v3704_v2  ;;  %v1506_v29 = vld [vmem:[%s4012_s5] sm:$0xff] }
 0x334   :  { %3519 = vmatprep.subr.mxu0 %v3704_v2 }
 0x335   :  { %3520 = vmatpush3.msra.mxu0 %v3256_v35  ;;  %v3271_v35 = vld [vmem:[%s4022_s9 + $0x18] sm:$0xff] }
 0x336   :  { %3521 = vmatprep.subr.mxu0 %v3704_v2 }
 0x337   :  { %3522 = vmatpush3.msra.mxu0 %v3255_v36 }
 0x338   :  { %3523 = vmatprep.subr.mxu0 %v3704_v2 }
 0x339   :  { %v1205_v38 = vld [vmem:[#allocation2 + $0x2] sm:$0xff]  ;;  %3524 = vmatpush3.msra.mxu0 %v3254_v37 }
 0x33a   :  { %v1204_v39 = vld [vmem:[#allocation2] sm:$0xff]  ;;  %1452 = vst.msk [vmem:[#allocation2 + $0x9] sm:$0x1] %vm913_vm11, %v3704_v2  ;;  %v1362_v42 = vmul.f32 %v1205_v38, %v3936_v9  ;;  %v1507_v9 = vld [vmem:[%s4012_s5 + $0x8] sm:$0xff]  ;;  %3542 = vmatprep.subr.mxu0 %v3267_v44 }
 0x33b   :  { %v1206_v41 = vmul.f32 %v1204_v39, %v3933_v8  ;;  %1451 = vst.msk [vmem:[#allocation2] sm:$0x1] %vm913_vm11, %v3704_v2  ;;  %v3261_v8 = vld [vmem:[%s4012_s5 + $0x18] sm:$0xff] }
 0x33c   :  { %3526 = vmatmul.mubr.msk.f32.vlgmr.msra.gmra.mxu0 %vm1158_vm3, %v1362_v42  ;;  %3528 = vmatprep.subr.mxu1 %v3261_v8 }
 0x33d   :  { %3515 = vmatmul.mubr.msk.f32.vlgmr.msra.gmra.mxu1 %vm1158_vm3, %v1206_v41  ;;  %3543 = vmatpush3.msra.mxu0 %v3267_v44  ;;  %v1771_v44 = vld [vmem:[%s4022_s9] sm:$0xff] }
 0x33e   :  { %3529 = vmatpush3.msra.mxu1 %v3261_v8  ;;  %3544 = vmatprep.subr.mxu0 %v3266_v45 }
 0x33f   :  { %3530 = vmatprep.subr.mxu1 %v3260_v43  ;;  %3545 = vmatpush3.msra.mxu0 %v3266_v45  ;;  %v3277_v45 = vld [vmem:[%s4022_s9 + $0x28] sm:$0xff] }
 0x340   :  { %3531 = vmatpush3.msra.mxu1 %v3260_v43  ;;  %3556 = vmatprep.subr.mxu0 %v4025_v46 }
 0x341   :  { %3535 = vmatprep.subr.mxu1 %v1507_v9 }
 0x3f2   :  { %v1285_v47 = vpop.f32.mrf.mxu0 }
 0x3f4   :  { %v3505_v48 = vpop.f32.mrf.mxu0 }
 0x3fc   :  { %v1437_v50 = vpop.f32.mrf.mxu0 }
 0x3fd   :  { %v1358_v49 = vpop.f32.mrf.mxu1 }
 0x3fe   :  { %v1359_v52 = vadd.f32 %v1358_v49, %v1285_v47  ;;  %v3527_v58 = vpop.f32.mrf.mxu0  ;;  %v3276_v47 = vld [vmem:[%s4022_s9 + $0x20] sm:$0xff] }
 0x3ff   :  { %v3516_v57 = vpop.f32.mrf.mxu1  ;;  %v3281_v58 = vld [vmem:[%s4080_s17 + $0x10] sm:$0xff] }
 0x400   :  { %v1441_v60 = vadd.f32 %v1437_v50, %v1359_v52 }
 0x402   :  { %v1449_v32 = vadd.f32 %v3259_v55, %v1441_v60  ;;  %v2098_v60 = vld [vmem:[%s4080_s17 + $0x8] sm:$0xff] }
 0x404   :  { %v1450_v63 = vmax.f32 %v1449_v32, 0.0  ;;  %v4086_v32 = vld [vmem:[%s4080_s17 + $0x28] sm:$0xff] }
 0x406   :  { %1453 = vst.msk [vmem:[#allocation2 + $0x1] sm:$0xff] %vm860_vm13, %v1450_v63  ;;  %v1484_v1 = vmul.f32 %v1482_v0, %v1450_v63  ;;  %v1467_v13 = vmul.f32 %v1465_v4, %v1450_v63  ;;  %v2372_v63 = vld [vmem:[%s3206_s21 + $0x8] sm:$0xff] }
 0x40d   :  { %v1454_v5 = vld [vmem:[#allocation2] sm:$0xff] }
 0x40e   :  { %v1455_v7 = vld [vmem:[#allocation2 + $0x2] sm:$0xff]  ;;  %v1479_v11 = vmul.f32 %v1477_v62, %v1454_v5  ;;  %v1462_v12 = vmul.f32 %v1460_v3, %v1454_v5 }
 0x40f   :  { %v1473_v19 = vmul.f32 %v1471_v6, %v1455_v7  ;;  %v1490_v21 = vmul.f32 %v1488_v10, %v1455_v7  ;;  %v2097_v62 = vld [vmem:[%s4080_s17] sm:$0xff] }
 0x410   :  { %v1485_v17 = vadd.f32 %v1484_v1, %v1479_v11  ;;  %v1468_v18 = vadd.f32 %v1467_v13, %v1462_v12  ;;  %v2371_v3 = vld [vmem:[%s3206_s21] sm:$0xff] }
 0x411   :  { %2375 = vperm.xlu1 %3683, %v2371_v3   ;;  %2410 = vperm.xlu0 %3685, %v2371_v3  }
 0x412   :  { %v1474_v22 = vadd.f32 %v1473_v19, %v1468_v18  ;;  %v1491_v23 = vadd.f32 %v1490_v21, %v1485_v17  ;;  %v3280_v19 = vld [vmem:[%s3201_s25] ss:$0 sm:$0xff] }
 0x414   :  { %1492 = vst [vmem:[#allocation2] ss:$2 sm:$0xff] %v1474_v22  ;;  %1493 = vst [vmem:[#allocation2 + $0x1] ss:$2 sm:$0xff] %v1491_v23 }
 0x415   :  { %3684 = vset.pattern.permute.xlu1 %v3720_v31  ;;  %2414 = vperm.xlu0 %3685, %v2372_v63  }
 0x416   :  { %2386 = vperm.xlu1 %3684, %v2371_v3  }
 0x419   :  { %3690 = vset.pattern.permute.xlu0 %v3722_v34 }
 0x41a   :  { %3686 = vset.pattern.permute.xlu1 %v3719_v30  ;;  %2432 = vperm.xlu0 %3690, %v2371_v3  }
 0x41b   :  { %v1494_v25 = vld [vmem:[#allocation2] sm:$0xff]  ;;  %v1495_v27 = vld [vmem:[#allocation2 + $0x8] sm:$0xff]  ;;  %2420 = vperm.xlu1 %3686, %v2371_v3  }
 0x41c   :  { %3532 = vmatprep.mubr.msk.f32.mxu1 %vm860_vm13, %v1494_v25  ;;  %1496 = vst.msk [vmem:[#allocation2] sm:$0x1] %vm913_vm11, %v3704_v2 }
 0x41d   :  { %1498 = vst.msk [vmem:[#allocation2 + $0x1] sm:$0xff] %vm860_vm13, %v1494_v25  ;;  %1499 = vst.msk [vmem:[#allocation2 + $0x9] sm:$0xff] %vm860_vm13, %v1495_v27  ;;  %3533 = vmatmul.mubr.msk.f32.vlgmr.msra.gmra.mxu1 %vm860_vm13, %v1495_v27 }
 0x41e   :  { %3536 = vmatpush3.msra.mxu1 %v1507_v9  ;;  %v3270_v9 = vld [vmem:[%s4022_s9 + $0x10] sm:$0xff]  ;;  %2436 = vperm.xlu0 %3690, %v2372_v63  }
 0x41f   :  { %3537 = vmatprep.subr.mxu1 %v1506_v29  ;;  %3687 = vset.pattern.permute.xlu1 %v3721_v33 }
 0x420   :  { %3538 = vmatpush3.msra.mxu1 %v1506_v29  ;;  %2398 = vperm.xlu1 %3687, %v2371_v3  }
 0x421   :  { %3549 = vmatprep.subr.mxu1 %v3271_v35 }
 0x424   :  { %v1500_v36 = vld [vmem:[#allocation2] sm:$0xff]  ;;  %v1501_v38 = vld [vmem:[#allocation2 + $0x8] sm:$0xff]  ;;  %3688 = vset.pattern.permute.xlu1 %v3717_v28 }
 0x425   :  { %v1502_v37 = vld [vmem:[#allocation2 + $0x2] sm:$0xff]  ;;  %v1504_v39 = vmul.f32 %v1500_v36, %v3780_v14  ;;  %1761 = vst.msk [vmem:[#allocation2] sm:$0x1] %vm913_vm11, %v3704_v2  ;;  %v1505_v42 = vmul.f32 %v1501_v38, %v3864_v54  ;;  %v1503_v8 = vld [vmem:[#allocation2 + $0xa] sm:$0xff]  ;;  %2380 = vperm.xlu1 %3688, %v2372_v63  }
 0x426   :  { %v1673_v41 = vmul.f32 %v1502_v37, %v3861_v53  ;;  %1763 = vst.msk [vmem:[#allocation2 + $0x1] sm:$0xff] %vm860_vm13, %v3900_v26  ;;  %v1674_v43 = vmul.f32 %v1503_v8, %v3783_v15  ;;  %1764 = vst.msk [vmem:[#allocation2 + $0x9] sm:$0xff] %vm860_vm13, %v3896_v24 }
 0x427   :  { %1762 = vst.msk [vmem:[#allocation2 + $0x11] sm:$0x1] %vm913_vm11, %v3704_v2  ;;  %3539 = vmatprep.mubr.msk.f32.mxu1 %vm860_vm13, %v1504_v39 }
 0x428   :  { %3546 = vmatprep.mubr.msk.f32.mxu0 %vm860_vm13, %v1673_v41  ;;  %3540 = vmatmul.mubr.msk.f32.vlgmr.msra.gmra.mxu1 %vm860_vm13, %v1505_v42 }
 0x429   :  { %3547 = vmatmul.mubr.msk.f32.vlgmr.msra.gmra.mxu0 %vm860_vm13, %v1674_v43  ;;  %3550 = vmatpush3.msra.mxu1 %v3271_v35 }
 0x42a   :  { %3553 = vmatprep.mubr.msk.f32.mxu1 %vm860_vm13, %v3900_v26  ;;  %3551 = vmatprep.subr.mxu1 %v3270_v9 }
 0x42b   :  { %3557 = vmatpush3.msra.mxu0 %v4025_v46  ;;  %3552 = vmatpush3.msra.mxu1 %v3270_v9 }
 0x42c   :  { %3558 = vmatprep.subr.mxu0 %v1771_v44  ;;  %3554 = vmatmul.mubr.msk.f32.vlgmr.msra.gmra.mxu1 %vm860_vm13, %v3896_v24  ;;  %v3282_v24 = vld [vmem:[%s4080_s17 + $0x18] sm:$0xff] }
 0x42d   :  { %3563 = vmatprep.subr.mxu1 %v3277_v45  ;;  %v1765_v48 = vld [vmem:[#allocation2] sm:$0xff]  ;;  %3559 = vmatpush3.msra.mxu0 %v1771_v44  ;;  %v1766_v50 = vld [vmem:[#allocation2 + $0x8] sm:$0xff] }
 0x42e   :  { %3564 = vmatpush3.msra.mxu1 %v3277_v45  ;;  %v1769_v49 = vmul.f32 %v1765_v48, %v3780_v14  ;;  %2087 = vst.msk [vmem:[#allocation2] sm:$0x1] %vm913_vm11, %v3704_v2  ;;  %v1767_v26 = vld [vmem:[#allocation2 + $0x2] sm:$0xff]  ;;  %v1768_v52 = vld [vmem:[#allocation2 + $0xa] sm:$0xff]  ;;  %v1770_v55 = vmul.f32 %v1766_v50, %v3864_v54  ;;  %3570 = vmatprep.subr.mxu0 %v3282_v24 }
 0x42f   :  { %3565 = vmatprep.subr.mxu1 %v3276_v47  ;;  %v1938_v46 = vmul.f32 %v1767_v26, %v3861_v53  ;;  %v1939_v57 = vmul.f32 %v1768_v52, %v3783_v15  ;;  %2088 = vst.msk [vmem:[#allocation2 + $0x11] sm:$0x1] %vm913_vm11, %v3704_v2  ;;  %3689 = vset.pattern.permute.xlu1 %v3720_v31 }
 0x430   :  { %3560 = vmatprep.mubr.msk.f32.mxu0 %vm860_vm13, %v1769_v49  ;;  %3566 = vmatpush3.msra.mxu1 %v3276_v47 }
 0x431   :  { %3567 = vmatprep.mubr.msk.f32.mxu1 %vm860_vm13, %v1938_v46  ;;  %3561 = vmatmul.mubr.msk.f32.vlgmr.msra.gmra.mxu0 %vm860_vm13, %v1770_v55 }
 0x432   :  { %3568 = vmatmul.mubr.msk.f32.vlgmr.msra.gmra.mxu1 %vm860_vm13, %v1939_v57  ;;  %3571 = vmatpush3.msra.mxu0 %v3282_v24 }
 0x433   :  { %3572 = vmatprep.subr.mxu0 %v3281_v58  ;;  %3577 = vmatprep.subr.mxu1 %v2098_v60 }
 0x434   :  { %3573 = vmatpush3.msra.mxu0 %v3281_v58  ;;  %3578 = vmatpush3.msra.mxu1 %v2098_v60 }
 0x435   :  { %3584 = vmatprep.subr.mxu0 %v4086_v32  ;;  %3579 = vmatprep.subr.mxu1 %v2097_v62 }
 0x436   :  { %3580 = vmatpush3.msra.mxu1 %v2097_v62  ;;  %2390 = vperm.xlu1 %3689, %v2372_v63  }
 0x43a   :  { %3691 = vset.pattern.permute.xlu1 %v3719_v30 }
 0x43b   :  { %2424 = vperm.xlu1 %3691, %v2372_v63  }
 0x43f   :  { %3692 = vset.pattern.permute.xlu1 %v3721_v33 }
 0x440   :  { %2402 = vperm.xlu1 %3692, %v2372_v63  }
 0x4dd   :  { %v3534_v0 = vpop.f32.mrf.mxu1 }
 0x4df   :  { %v1583_v34 = vpop.f32.mrf.mxu1 }
 0x4e8   :  { %v3541_v4 = vpop.f32.mrf.mxu1 }
 0x4e9   :  { %v3548_v5 = vpop.f32.mrf.mxu0  ;;  %v1670_v10 = vadd.f32 %v3541_v4, %v3534_v0  ;;  %v2064_v4 = vld [vmem:[%s3202_s29] sm:$0x1] }
 0x4ea   :  { %v1664_v6 = vpop.f32.mrf.mxu1 }
 0x4eb   :  { %v1750_v28 = vpop.f32.mrf.mxu0  ;;  %v1665_v30 = vadd.f32 %v1664_v6, %v1583_v34  ;;  %v1760_v33 = vadd.f32 %v3548_v5, %v1670_v10 }
 0x4ec   :  { %v3555_v7 = vpop.f32.mrf.mxu1 }
 0x4ed   :  { %v1759_v22 = vadd.f32 %v1750_v28, %v1665_v30 }
 0x4ee   :  { %v1848_v31 = vpop.f32.mrf.mxu1 }
 0x4f1   :  { %v3562_v11 = vpop.f32.mrf.mxu0 }
 0x4f2   :  { %v1935_v12 = vadd.f32 %v3562_v11, %v3555_v7  ;;  %v3569_v1 = vpop.f32.mrf.mxu1  ;;  %v2068_v7 = vld [vmem:[%s3203_s3] sm:$0x1] }
 0x4f3   :  { %v1929_v13 = vpop.f32.mrf.mxu0 }
 0x4f4   :  { %v2025_v17 = vadd.f32 %v3569_v1, %v1935_v12  ;;  %v1930_v18 = vadd.f32 %v1929_v13, %v1848_v31  ;;  %v2015_v21 = vpop.f32.mrf.mxu1 }
 0x4f6   :  { %v2027_v23 = vadd.f32 %v2025_v17, %v1760_v33  ;;  %v2024_v25 = vadd.f32 %v2015_v21, %v1930_v18  ;;  %v3287_v33 = vld [vmem:[%s4080_s17 + $0x20] sm:$0xff] }
 0x4f8   :  { %v2036_v27 = vadd.f32 %v3280_v19, %v2027_v23  ;;  %v2026_v29 = vadd.f32 %v2024_v25, %v1759_v22 }
 0x4fa   :  { %v2038_v35 = vmax.f32 %v2036_v27, 0.0  ;;  %v2035_v36 = vadd.f32 %v3280_v19, %v2026_v29  ;;  %v4146_v29 = vld [vmem:[%s4143_s11 + $0x8] sm:$0xff] }
 0x4fc   :  { %v2050_v37 = vmul.f32 %v2038_v35, %v2038_v35  ;;  %v2037_v38 = vmax.f32 %v2035_v36, 0.0  ;;  %v2040_v39 = vsel %vm860_vm13, %v2038_v35, 0.0 }
 0x4fe   :  { %v2039_v41 = vsel %vm860_vm13, %v2037_v38, 0.0  ;;  %v2049_v42 = vmul.f32 %v2037_v38, %v2037_v38  ;;  %v2052_v43 = vsel %vm860_vm13, %v2050_v37, 0.0 }
 0x4ff   :  { %v2041_v8 = vadd.f32 %v2040_v39, %v2039_v41 }
 0x500   :  { %v2051_v9 = vsel %vm860_vm13, %v2049_v42, 0.0 }
 0x501   :  { %v2042_v44 = vrot.slane %v2041_v8, 4  ;;  %v2053_v45 = vadd.f32 %v2052_v43, %v2051_v9 }
 0x503   :  { %v2043_v47 = vadd.f32 %v2042_v44, %v2041_v8  ;;  %v2054_v48 = vrot.slane %v2053_v45, 4  ;;  %v2411_v44 = vpop.permute.xlu0 %2410 }
 0x505   :  { %v2044_v49 = vrot.slane %v2043_v47, 2  ;;  %v2055_v26 = vadd.f32 %v2054_v48, %v2053_v45  ;;  %v3291_v45 = vld [vmem:[%s3205_s15] ss:$0 sm:$0xff] }
 0x507   :  { %v2045_v50 = vadd.f32 %v2044_v49, %v2043_v47  ;;  %v2056_v52 = vrot.slane %v2055_v26, 2 }
 0x509   :  { %v2046_v46 = vrot.slane %v2045_v50, 1  ;;  %v2057_v55 = vadd.f32 %v2056_v52, %v2055_v26 }
 0x50b   :  { %v2058_v57 = vrot.slane %v2057_v55, 1  ;;  %v2047_v24 = vadd.f32 %v2046_v46, %v2045_v50 }
 0x50d   :  { %v2059_v58 = vadd.f32 %v2058_v57, %v2057_v55  ;;  %v2048_v60 = vmul.f32 0.0625, %v2047_v24  ;;  %v2415_v24 = vpop.permute.xlu0 %2414 }
 0x50f   :  { %v2060_v62 = vmul.f32 0.0625, %v2059_v58  ;;  %v2061_v3 = vmul.f32 %v2048_v60, %v2048_v60 }
 0x511   :  { %v2062_v63 = vsub.f32 %v2060_v62, %v2061_v3  ;;  %v2433_v62 = vpop.permute.xlu0 %2432 }
 0x513   :  { %v2063_v0 = vmax.f32 %v2062_v63, 0.0 }
 0x515   :  { %v2065_v34 = vadd.f32 1e-05, %v2063_v0 }
 0x517   :  { %3699 = vrsqrt.f32 %v2065_v34 }
 0x524   :  { %v3700_v5 = vpop.eup %3699 }
 0x525   :  { %v2067_v6 = vmul.f32 %v3700_v5, %v2064_v4 }
 0x527   :  { %v2069_v28 = vmul.f32 %v2067_v6, %v2048_v60  ;;  %v2075_v31 = vrot.slane %v2067_v6, %v3846_v40 }
 0x529   :  { %v2070_v10 = vsub.f32 %v2068_v7, %v2069_v28  ;;  %v2077_v11 = vmul.f32 %v2075_v31, %v2037_v38  ;;  %v2078_v30 = vmul.f32 %v2075_v31, %v2038_v35  ;;  %v2376_v35 = vpop.permute.xlu1 %2375 }
 0x52b   :  { %v2083_v12 = vrot.slane %v2070_v10, %v3846_v40 }
 0x52d   :  { %v2085_v1 = vadd.f32 %v2083_v12, %v2077_v11  ;;  %v2086_v13 = vadd.f32 %v2083_v12, %v2078_v30  ;;  %v2387_v36 = vpop.permute.xlu1 %2386  ;;  %v2437_v11 = vpop.permute.xlu0 %2436 }
 0x52f   :  { %3574 = vmatprep.mubr.msk.f32.mxu0 %vm860_vm13, %v2085_v1  ;;  %2089 = vst.msk [vmem:[#allocation2 + $0x1] sm:$0xff] %vm860_vm13, %v2085_v1  ;;  %2090 = vst.msk [vmem:[#allocation2 + $0x9] sm:$0xff] %vm860_vm13, %v2086_v13 }
 0x530   :  { %3575 = vmatmul.mubr.msk.f32.vlgmr.msra.gmra.mxu0 %vm860_vm13, %v2086_v13 }
 0x531   :  { %3585 = vmatpush3.msra.mxu0 %v4086_v32  ;;  %v4137_v32 = vld [vmem:[%s3207_s7 + $0x10] sm:$0xff]  ;;  %v2421_v37 = vpop.permute.xlu1 %2420 }
 0x532   :  { %3586 = vmatprep.subr.mxu0 %v3287_v33 }
 0x533   :  { %3587 = vmatpush3.msra.mxu0 %v3287_v33 }
 0x535   :  { %v2399_v39 = vpop.permute.xlu1 %2398 }
 0x536   :  { %v2091_v17 = vld [vmem:[#allocation2] sm:$0xff]  ;;  %v2092_v19 = vld [vmem:[#allocation2 + $0x8] sm:$0xff] }
 0x537   :  { %v2093_v18 = vld [vmem:[#allocation2 + $0x2] sm:$0xff]  ;;  %v2095_v21 = vmul.f32 %v2091_v17, %v3780_v14  ;;  %2363 = vst.msk [vmem:[#allocation2] sm:$0x1] %vm586_vm7, %v3704_v2  ;;  %v2096_v23 = vmul.f32 %v2092_v19, %v3864_v54  ;;  %v2094_v25 = vld [vmem:[#allocation2 + $0xa] sm:$0xff] }
 0x538   :  { %v2264_v22 = vmul.f32 %v2093_v18, %v3861_v53  ;;  %v2265_v27 = vmul.f32 %v2094_v25, %v3783_v15  ;;  %2364 = vst.msk [vmem:[#allocation2 + $0x11] sm:$0x1] %vm586_vm7, %v3704_v2  ;;  %v3292_v53 = vld [vmem:[%s3207_s7 + $0x8] sm:$0xff]  ;;  %v2469_v54 = vld [vmem:[%s3207_s7] sm:$0xff] }
 0x539   :  { %3581 = vmatprep.mubr.msk.f32.mxu1 %vm860_vm13, %v2095_v21  ;;  %3591 = vmatprep.subr.mxu1 %v3292_v53  ;;  %v2381_v43 = vpop.permute.xlu1 %2380 }
 0x53a   :  { %3588 = vmatprep.mubr.msk.f32.mxu0 %vm860_vm13, %v2264_v22  ;;  %3582 = vmatmul.mubr.msk.f32.vlgmr.msra.gmra.mxu1 %vm860_vm13, %v2096_v23 }
 0x53b   :  { %3589 = vmatmul.mubr.msk.f32.vlgmr.msra.gmra.mxu0 %vm860_vm13, %v2265_v27  ;;  %3592 = vmatpush3.msra.mxu1 %v3292_v53 }
 0x53c   :  { %3599 = vmatprep.subr.mxu0 %v2469_v54  ;;  %3607 = vmatprep.subr.mxu1 %v4137_v32 }
 0x53d   :  { %3600 = vmatpush3.msra.mxu0 %v2469_v54  ;;  %v2391_v57 = vpop.permute.xlu1 %2390 }
 0x53e   :  { %3615 = vmatprep.subr.mxu0 %v4146_v29 }
 0x541   :  { %v2425_v60 = vpop.permute.xlu1 %2424 }
 0x545   :  { %v2403_v3 = vpop.permute.xlu1 %2402 }
 0x5f0   :  { %v3576_v38 = vpop.f32.mrf.mxu0 }
 0x5f2   :  { %v2174_v41 = vpop.f32.mrf.mxu0 }
 0x5fa   :  { %v3583_v42 = vpop.f32.mrf.mxu1 }
 0x5fb   :  { %v3590_v8 = vpop.f32.mrf.mxu0  ;;  %v2261_v9 = vadd.f32 %v3583_v42, %v3576_v38  ;;  %v2791_v38 = vld [vmem:[%s4143_s11] sm:$0xff] }
 0x5fc   :  { %v2255_v47 = vpop.f32.mrf.mxu1 }
 0x5fd   :  { %v2351_v48 = vadd.f32 %v3590_v8, %v2261_v9  ;;  %v2256_v49 = vadd.f32 %v2255_v47, %v2174_v41  ;;  %v2341_v26 = vpop.f32.mrf.mxu0 }
 0x5ff   :  { %v2360_v50 = vadd.f32 %v3291_v45, %v2351_v48  ;;  %v2350_v52 = vadd.f32 %v2341_v26, %v2256_v49  ;;  %v3315_v49 = vld [vmem:[%s4143_s11 + $0x10] sm:$0xff] }
 0x601   :  { %v2362_v46 = vmax.f32 %v2360_v50, 0.0  ;;  %v2359_v55 = vadd.f32 %v3291_v45, %v2350_v52 }
 0x603   :  { %2366 = vst.msk [vmem:[#allocation2 + $0x9] sm:$0xff] %vm512_vm8, %v2362_v46  ;;  %v2361_v58 = vmax.f32 %v2359_v55, 0.0  ;;  %v2394_v6 = vmul.f32 %v2391_v57, %v2362_v46  ;;  %v2428_v12 = vmul.f32 %v2425_v60, %v2362_v46 }
 0x605   :  { %2365 = vst.msk [vmem:[#allocation2 + $0x1] sm:$0xff] %vm512_vm8, %v2361_v58  ;;  %v2393_v4 = vmul.f32 %v2387_v36, %v2361_v58  ;;  %v2427_v10 = vmul.f32 %v2421_v37, %v2361_v58 }
 0x60a   :  { %v2370_v63 = vld [vmem:[#allocation2 + $0xa] sm:$0xff] }
 0x60b   :  { %v2406_v13 = vmul.f32 %v2403_v3, %v2370_v63  ;;  %v2440_v22 = vmul.f32 %v2437_v11, %v2370_v63 }
 0x60c   :  { %v2367_v0 = vld [vmem:[#allocation2] sm:$0xff]  ;;  %v2368_v5 = vld [vmem:[#allocation2 + $0x8] sm:$0xff] }
 0x60d   :  { %v2369_v34 = vld [vmem:[#allocation2 + $0x2] sm:$0xff]  ;;  %v2383_v7 = vmul.f32 %v2376_v35, %v2367_v0  ;;  %v2384_v28 = vmul.f32 %v2381_v43, %v2368_v5  ;;  %v2417_v31 = vmul.f32 %v2411_v44, %v2367_v0  ;;  %v2418_v1 = vmul.f32 %v2415_v24, %v2368_v5 }
 0x60e   :  { %v2405_v30 = vmul.f32 %v2399_v39, %v2369_v34  ;;  %v2439_v19 = vmul.f32 %v2433_v62, %v2369_v34 }
 0x60f   :  { %v2395_v33 = vadd.f32 %v2393_v4, %v2383_v7  ;;  %v2396_v17 = vadd.f32 %v2394_v6, %v2384_v28  ;;  %v2429_v18 = vadd.f32 %v2427_v10, %v2417_v31  ;;  %v2430_v21 = vadd.f32 %v2428_v12, %v2418_v1 }
 0x611   :  { %v2407_v23 = vadd.f32 %v2405_v30, %v2395_v33  ;;  %v2441_v25 = vadd.f32 %v2439_v19, %v2429_v18  ;;  %v2408_v27 = vadd.f32 %v2406_v13, %v2396_v17  ;;  %v2442_v53 = vadd.f32 %v2440_v22, %v2430_v21  ;;  %v3320_v22 = vld [vmem:[%s3209_s19] ss:$0 sm:$0xff] }
 0x613   :  { %2443 = vst [vmem:[#allocation2] ss:$2 sm:$0xff] %v2407_v23  ;;  %2444 = vst [vmem:[#allocation2 + $0x10] ss:$2 sm:$0xff] %v2408_v27 }
 0x614   :  { %2445 = vst [vmem:[#allocation2 + $0x1] ss:$2 sm:$0xff] %v2441_v25  ;;  %2446 = vst [vmem:[#allocation2 + $0x11] ss:$2 sm:$0xff] %v2442_v53 }
 0x61b   :  { %v2447_v54 = vld [vmem:[#allocation2] sm:$0xff]  ;;  %v2448_v35 = vld [vmem:[#allocation2 + $0x8] sm:$0xff]  ;;  %v2449_v36 = vld [vmem:[#allocation2 + $0x10] sm:$0xff] }
 0x61c   :  { %3593 = vmatprep.mubr.msk.f32.mxu1 %vm512_vm8, %v2447_v54  ;;  %2451 = vst.msk [vmem:[#allocation2] sm:$0x1] %vm586_vm7, %v3704_v2  ;;  %v2450_v37 = vld [vmem:[#allocation2 + $0x18] sm:$0xff] }
 0x61d   :  { %2453 = vst.msk [vmem:[#allocation2 + $0x1] sm:$0xff] %vm512_vm8, %v2447_v54  ;;  %3594 = vmatmul.mubr.msk.f32.vlgmr.msra.gmra.mxu1 %vm512_vm8, %v2448_v35  ;;  %2454 = vst.msk [vmem:[#allocation2 + $0x9] sm:$0xff] %vm512_vm8, %v2448_v35 }
 0x61e   :  { %2456 = vst.msk [vmem:[#allocation2 + $0x19] sm:$0xff] %vm512_vm8, %v2450_v37  ;;  %2455 = vst.msk [vmem:[#allocation2 + $0x11] sm:$0xff] %vm512_vm8, %v2449_v36  ;;  %3596 = vmatprep.mubr.msk.f32.mxu1 %vm512_vm8, %v2449_v36  ;;  %3608 = vmatpush3.msra.mxu1 %v4137_v32 }
 0x61f   :  { %3623 = vmatprep.subr.mxu1 %v2791_v38 }
 0x621   :  { %3597 = vmatmul.mubr.msk.f32.gmra.mxu1 %vm512_vm8, %v2450_v37 }
 0x624   :  { %v2457_v39 = vld [vmem:[#allocation2] sm:$0xff]  ;;  %v2458_v43 = vld [vmem:[#allocation2 + $0x8] sm:$0xff] }
 0x625   :  { %v2461_v41 = vld [vmem:[#allocation2 + $0x2] sm:$0xff]  ;;  %v2465_v42 = vmul.f32 %v2457_v39, %v3780_v14  ;;  %2773 = vst.msk [vmem:[#allocation2] sm:$0x1] %vm586_vm7, %v3704_v2  ;;  %v2462_v8 = vld [vmem:[#allocation2 + $0xa] sm:$0xff]  ;;  %v2463_v32 = vld [vmem:[#allocation2 + $0x12] sm:$0xff] }
 0x626   :  { %3609 = vmatprep.mubr.msk.f32.mxu1 %vm512_vm8, %v2461_v41  ;;  %v2667_v9 = vmul.f32 %v2462_v8, %v3783_v15  ;;  %2775 = vst.msk [vmem:[#allocation2 + $0x1] sm:$0xff] %vm512_vm8, %v3819_v56  ;;  %v2459_v44 = vld [vmem:[#allocation2 + $0x10] sm:$0xff]  ;;  %v2464_v45 = vld [vmem:[#allocation2 + $0x1a] sm:$0xff] }
 0x627   :  { %3601 = vmatprep.mubr.msk.f32.mxu0 %vm512_vm8, %v2465_v42  ;;  %2776 = vst.msk [vmem:[#allocation2 + $0x9] sm:$0xff] %vm512_vm8, %v3815_v51  ;;  %v2460_v47 = vld [vmem:[#allocation2 + $0x18] sm:$0xff]  ;;  %v2467_v48 = vmul.f32 %v2459_v44, %v3786_v16 }
 0x628   :  { %2774 = vst.msk [vmem:[#allocation2 + $0x21] sm:$0x1] %vm586_vm7, %v3704_v2  ;;  %3610 = vmatmul.mubr.msk.f32.vlgmr.msra.gmra.mxu1 %vm512_vm8, %v2667_v9  ;;  %3602 = vmatmul.mubr.msk.f32.vlgmr.msra.gmra.mxu0 %vm512_vm8, %v2458_v43  ;;  %v2669_v2 = vmul.f32 %v2464_v45, %v3789_v20 }
 0x629   :  { %2778 = vst.msk [vmem:[#allocation2 + $0x19] sm:$0xff] %vm512_vm8, %v3823_v59  ;;  %2777 = vst.msk [vmem:[#allocation2 + $0x11] sm:$0xff] %vm512_vm8, %v3827_v61  ;;  %3612 = vmatprep.mubr.msk.f32.mxu1 %vm512_vm8, %v2463_v32  ;;  %3616 = vmatpush3.msra.mxu0 %v4146_v29 }
 0x62a   :  { %3604 = vmatprep.mubr.msk.f32.mxu0 %vm512_vm8, %v2467_v48  ;;  %3624 = vmatpush3.msra.mxu1 %v2791_v38 }
 0x62b   :  { %3631 = vmatprep.subr.mxu0 %v3315_v49 }
 0x62c   :  { %3613 = vmatmul.mubr.msk.f32.gmra.mxu1 %vm512_vm8, %v2669_v2  ;;  %3605 = vmatmul.mubr.msk.f32.gmra.mxu0 %vm512_vm8, %v2460_v47 }
 0x62d   :  { %3617 = vmatprep.mubr.msk.f32.mxu0 %vm512_vm8, %v3819_v56  ;;  %v2779_v26 = vld [vmem:[#allocation2] sm:$0xff] }
 0x62e   :  { %v2787_v50 = vmul.f32 %v2779_v26, %v3780_v14  ;;  %v2780_v29 = vld [vmem:[#allocation2 + $0x8] sm:$0xff] }
 0x62f   :  { %v2783_v55 = vld [vmem:[#allocation2 + $0x2] sm:$0xff] }
 0x630   :  { %v2781_v52 = vld [vmem:[#allocation2 + $0x10] sm:$0xff]  ;;  %3625 = vmatprep.mubr.msk.f32.mxu1 %vm512_vm8, %v2787_v50  ;;  %3618 = vmatmul.mubr.msk.f32.vlgmr.msra.gmra.mxu0 %vm512_vm8, %v3815_v51  ;;  %v2782_v14 = vld [vmem:[#allocation2 + $0x18] sm:$0xff] }
 0x631   :  { %v2789_v46 = vmul.f32 %v2781_v52, %v3786_v16  ;;  %3626 = vmatmul.mubr.msk.f32.vlgmr.msra.gmra.mxu1 %vm512_vm8, %v2780_v29  ;;  %3632 = vmatpush3.msra.mxu0 %v3315_v49  ;;  %v2784_v56 = vld [vmem:[#allocation2 + $0xa] sm:$0xff]  ;;  %v2786_v51 = vld [vmem:[#allocation2 + $0x1a] sm:$0xff]  ;;  %v2785_v57 = vld [vmem:[#allocation2 + $0x12] sm:$0xff] }
 0x632   :  { %3620 = vmatprep.mubr.msk.f32.mxu0 %vm512_vm8, %v3827_v61  ;;  %v2989_v16 = vmul.f32 %v2784_v56, %v3783_v15  ;;  %v2991_v61 = vmul.f32 %v2786_v51, %v3789_v20 }
 0x633   :  { %3628 = vmatprep.mubr.msk.f32.mxu1 %vm512_vm8, %v2789_v46 }
 0x634   :  { %3621 = vmatmul.mubr.msk.f32.gmra.mxu0 %vm512_vm8, %v3823_v59 }
 0x635   :  { %3629 = vmatmul.mubr.msk.f32.gmra.mxu1 %vm512_vm8, %v2782_v14  ;;  %3633 = vmatprep.mubr.msk.f32.mxu0 %vm512_vm8, %v2783_v55 }
 0x638   :  { %3634 = vmatmul.mubr.msk.f32.vlgmr.msra.gmra.mxu0 %vm512_vm8, %v2989_v16 }
 0x639   :  { %3636 = vmatprep.mubr.msk.f32.mxu0 %vm512_vm8, %v2785_v57 }
 0x63c   :  { %3637 = vmatmul.mubr.msk.f32.gmra.mxu0 %vm512_vm8, %v2991_v61 }
 0x6dd   :  { %v3595_v24 = vpop.f32.mrf.mxu1 }
 0x6df   :  { %v2550_v59 = vpop.f32.mrf.mxu1 }
 0x6e1   :  { %v3598_v58 = vpop.f32.mrf.mxu1 }
 0x6e3   :  { %v2560_v60 = vpop.f32.mrf.mxu1 }
 0x6e8   :  { %v3611_v62 = vpop.f32.mrf.mxu1  ;;  %v3603_v3 = vpop.f32.mrf.mxu0 }
 0x6e9   :  { %v2653_v10 = vadd.f32 %v3603_v3, %v3595_v24 }
 0x6ea   :  { %v2750_v63 = vpop.f32.mrf.mxu1  ;;  %v2647_v0 = vpop.f32.mrf.mxu0 }
 0x6eb   :  { %v2648_v12 = vadd.f32 %v2647_v0, %v2550_v59  ;;  %v2770_v17 = vadd.f32 %v3611_v62, %v2653_v10 }
 0x6ec   :  { %v3614_v34 = vpop.f32.mrf.mxu1  ;;  %v3606_v15 = vpop.f32.mrf.mxu0 }
 0x6ed   :  { %v2663_v13 = vadd.f32 %v3606_v15, %v3598_v58  ;;  %v2769_v25 = vadd.f32 %v2750_v63, %v2648_v12 }
 0x6ee   :  { %v2760_v4 = vpop.f32.mrf.mxu1  ;;  %v2657_v5 = vpop.f32.mrf.mxu0 }
 0x6ef   :  { %v2772_v35 = vadd.f32 %v3614_v34, %v2663_v13  ;;  %v2658_v36 = vadd.f32 %v2657_v5, %v2560_v60 }
 0x6f0   :  { %v3619_v6 = vpop.f32.mrf.mxu0 }
 0x6f1   :  { %v3627_v7 = vpop.f32.mrf.mxu1  ;;  %v2771_v44 = vadd.f32 %v2760_v4, %v2658_v36 }
 0x6f2   :  { %v2872_v28 = vpop.f32.mrf.mxu0  ;;  %v2975_v1 = vadd.f32 %v3627_v7, %v3619_v6 }
 0x6f3   :  { %v2969_v20 = vpop.f32.mrf.mxu1 }
 0x6f4   :  { %v3622_v31 = vpop.f32.mrf.mxu0  ;;  %v2970_v18 = vadd.f32 %v2969_v20, %v2872_v28 }
 0x6f5   :  { %v3630_v11 = vpop.f32.mrf.mxu1 }
 0x6f6   :  { %v2882_v30 = vpop.f32.mrf.mxu0  ;;  %v2985_v27 = vadd.f32 %v3630_v11, %v3622_v31 }
 0x6f7   :  { %v2979_v21 = vpop.f32.mrf.mxu1 }
 0x6f8   :  { %v3635_v33 = vpop.f32.mrf.mxu0  ;;  %v2980_v38 = vadd.f32 %v2979_v21, %v2882_v30 }
 0x6f9   :  { %v3092_v19 = vadd.f32 %v3635_v33, %v2975_v1 }
 0x6fa   :  { %v3072_v23 = vpop.f32.mrf.mxu0 }
 0x6fb   :  { %v3096_v53 = vadd.f32 %v3092_v19, %v2770_v17  ;;  %v3091_v54 = vadd.f32 %v3072_v23, %v2970_v18  ;;  %v3149_v19 = vld [vmem:[%s3210_s23] sm:$0x1] }
 0x6fc   :  { %v3638_v37 = vpop.f32.mrf.mxu0  ;;  %v3153_v23 = vld [vmem:[%s3211_s27] sm:$0x1] }
 0x6fd   :  { %v3107_v39 = vadd.f32 %v3320_v22, %v3096_v53  ;;  %v3095_v41 = vadd.f32 %v3091_v54, %v2769_v25  ;;  %v3094_v42 = vadd.f32 %v3638_v37, %v2985_v27 }
 0x6fe   :  { %v3082_v8 = vpop.f32.mrf.mxu0 }
 0x6ff   :  { %v3106_v43 = vadd.f32 %v3320_v22, %v3095_v41  ;;  %v3098_v9 = vadd.f32 %v3094_v42, %v2772_v35  ;;  %v3093_v32 = vadd.f32 %v3082_v8, %v2980_v38  ;;  %v3111_v45 = vmax.f32 %v3107_v39, 0.0 }
 0x701   :  { %v3110_v47 = vmax.f32 %v3106_v43, 0.0  ;;  %v3109_v48 = vadd.f32 %v3320_v22, %v3098_v9  ;;  %v3097_v49 = vadd.f32 %v3093_v32, %v2771_v44  ;;  %v3129_v26 = vmul.f32 %v3111_v45, %v3111_v45 }
 0x702   :  { %v3115_v46 = vsel %vm166_vm2, %v3111_v45, 0.0 }
 0x703   :  { %v3128_v2 = vmul.f32 %v3110_v47, %v3110_v47  ;;  %v3114_v50 = vsel %vm166_vm2, %v3110_v47, 0.0  ;;  %v3113_v52 = vmax.f32 %v3109_v48, 0.0  ;;  %v3108_v29 = vadd.f32 %v3320_v22, %v3097_v49 }
 0x704   :  { %v3116_v55 = vadd.f32 %v3115_v46, %v3114_v50  ;;  %v3133_v16 = vsel %vm166_vm2, %v3129_v26, 0.0 }
 0x705   :  { %v3132_v56 = vsel %vm166_vm2, %v3128_v2, 0.0  ;;  %v3112_v14 = vmax.f32 %v3108_v29, 0.0  ;;  %v3131_v51 = vmul.f32 %v3113_v52, %v3113_v52  ;;  %v3119_v58 = vsel %vm166_vm2, %v3113_v52, 0.0 }
 0x706   :  { %v3134_v24 = vadd.f32 %v3133_v16, %v3132_v56 }
 0x707   :  { %v3117_v57 = vsel %vm166_vm2, %v3112_v14, 0.0  ;;  %v3130_v61 = vmul.f32 %v3112_v14, %v3112_v14  ;;  %v3137_v63 = vsel %vm166_vm2, %v3131_v51, 0.0 }
 0x708   :  { %v3118_v59 = vadd.f32 %v3117_v57, %v3116_v55 }
 0x709   :  { %v3135_v60 = vsel %vm166_vm2, %v3130_v61, 0.0 }
 0x70a   :  { %v3120_v62 = vadd.f32 %v3119_v58, %v3118_v59  ;;  %v3136_v3 = vadd.f32 %v3135_v60, %v3134_v24 }
 0x70c   :  { %v3121_v0 = vrot.slane %v3120_v62, 4  ;;  %v3138_v34 = vadd.f32 %v3137_v63, %v3136_v3 }
 0x70e   :  { %v3122_v15 = vadd.f32 %v3121_v0, %v3120_v62  ;;  %v3139_v4 = vrot.slane %v3138_v34, 4 }
 0x710   :  { %v3123_v5 = vrot.slane %v3122_v15, 2  ;;  %v3140_v6 = vadd.f32 %v3139_v4, %v3138_v34 }
 0x712   :  { %v3124_v7 = vadd.f32 %v3123_v5, %v3122_v15  ;;  %v3141_v28 = vrot.slane %v3140_v6, 2 }
 0x714   :  { %v3125_v20 = vrot.slane %v3124_v7, 1  ;;  %v3142_v31 = vadd.f32 %v3141_v28, %v3140_v6 }
 0x716   :  { %v3126_v10 = vadd.f32 %v3125_v20, %v3124_v7  ;;  %v3143_v11 = vrot.slane %v3142_v31, 1 }
 0x718   :  { %v3127_v30 = vmul.f32 0.03125, %v3126_v10  ;;  %v3144_v12 = vadd.f32 %v3143_v11, %v3142_v31 }
 0x71a   :  { %v3145_v1 = vmul.f32 0.03125, %v3144_v12  ;;  %v3146_v13 = vmul.f32 %v3127_v30, %v3127_v30 }
 0x71c   :  { %v3147_v33 = vsub.f32 %v3145_v1, %v3146_v13 }
 0x71e   :  { %v3148_v17 = vmax.f32 %v3147_v33, 0.0 }
 0x720   :  { %v3150_v18 = vadd.f32 1e-05, %v3148_v17 }
 0x722   :  { %3701 = vrsqrt.f32 %v3150_v18 }
 0x72f   :  { %v3702_v21 = vpop.eup %3701 }
 0x730   :  { %v3152_v22 = vmul.f32 %v3702_v21, %v3149_v19 }
 0x732   :  { %v3154_v25 = vmul.f32 %v3152_v22, %v3127_v30  ;;  %v3160_v27 = vrot.slane %v3152_v22, %v3846_v40 }
 0x734   :  { %v3155_v53 = vsub.f32 %v3153_v23, %v3154_v25  ;;  %v3162_v54 = vmul.f32 %v3160_v27, %v3110_v47  ;;  %v3163_v35 = vmul.f32 %v3160_v27, %v3111_v45  ;;  %v3164_v36 = vmul.f32 %v3160_v27, %v3112_v14 }
 0x735   :  { %v3165_v37 = vmul.f32 %v3160_v27, %v3113_v52 }
 0x736   :  { %v3170_v38 = vrot.slane %v3155_v53, %v3846_v40 }
 0x738   :  { %v3172_v39 = vadd.f32 %v3170_v38, %v3162_v54  ;;  %v3173_v41 = vadd.f32 %v3170_v38, %v3163_v35  ;;  %v3174_v42 = vadd.f32 %v3170_v38, %v3164_v36  ;;  %v3175_v8 = vadd.f32 %v3170_v38, %v3165_v37 }
 0x73a   :  { %3176 = vst.msk [vmem:[%s3212_s1] sm:$0xff] %vm166_vm2, %v3172_v39  ;;  %3177 = vst.msk [vmem:[%s3212_s1 + $0x8] sm:$0xff] %vm166_vm2, %v3173_v41 }
 0x73b   :  { %3178 = vst.msk [vmem:[%s3212_s1 + $0x10] sm:$0xff] %vm166_vm2, %v3174_v42  ;;  %3179 = vst.msk [vmem:[%s3212_s1 + $0x18] sm:$0xff] %vm166_vm2, %v3175_v8 }

</bundles_post_ra>
